<compile_context>
chip_gen: v5e
topology: v5e:2x2
jax: 0.10.0
libtpu: 0.0.40
codegen_flags: <defaults>
</compile_context>

<pallas_src>
import functools

import numpy as np
import jax
import jax.numpy as jnp
from jax import lax
from jax.experimental import pallas as pl
from jax.experimental.pallas import tpu as pltpu

_LANE = 128
_CHANNELS = 2
_RADIUS = 1


def _make_cppn_like_kernel(channels=2, radius=1, seed=0):
    # TODO(synk): the CPPN network used by Rule.generate_cppn is not provided;
    # this builds a deterministic kernel with the same shape (2*C, Rk, Rk) and
    # the same post-processing structure (flip-symmetrize, zero-mean,
    # parity * falloff masking, concat with spatial transpose).
    Rk = 2 * radius + 1
    rng = np.random.RandomState(seed)
    k = rng.randn(channels, Rk, Rk).astype(np.float32)
    k = 0.5 * (k + k[:, ::-1, ::-1])                        # (k + k.flip(2,3)) / 2
    k = k - k.mean(axis=(1, 2), keepdims=True)              # per-channel zero mean
    xs = np.linspace(-1.0, 1.0, Rk, dtype=np.float32)       # proxy CPPN coordinates
    gx, gy = np.meshgrid(xs, xs, indexing="ij")
    parity = np.sign(gx) * (np.abs(gx) > 1e-6).astype(np.float32)
    falloff = np.sqrt(gx ** 2 + gy ** 2).astype(np.float32)
    k = k * falloff[None] * parity[None]
    k = np.concatenate([k, np.transpose(k, (0, 2, 1))], axis=0)   # (2C, Rk, Rk)
    return k.astype(np.float32)


def _make_directions():
    s = 2.0 ** (-0.5)
    return np.array(
        [[s, s], [0.0, 1.0], [-s, s], [1.0, 0.0], [0.0, 0.0],
         [-1.0, 0.0], [s, -s], [0.0, -1.0], [-s, -s]], dtype=np.float32)


# Deterministic "parameters" of the Rule module (CHANNELS=2, RADIUS=1).
_KW = _make_cppn_like_kernel(_CHANNELS, _RADIUS, seed=0)   # (2*C, 3, 3) conv weights
_DIRS = _make_directions()                                 # (9, 2)


def _rule_kernel(mass_in_ref, mom_in_ref, frc_in_ref, a_ref,
                 mass_ref, mom_ref, frc_ref,
                 *, kw, dirs, dt, temp, fdelta, w_logical, num_steps):
    """Fused num_steps x Rule.forward rollout in one kernel invocation.

    All refs are lane-tiled (H, 128) / (2, H, 128) f32 planes: lane l carries
    logical column l % W.  State is carried through an in-kernel step loop and
    written to the outputs once at the end.
    """
    H = mass_in_ref.shape[0]
    W = w_logical

    def row_shift(p, da):
        # out[i, l] == p[(i + da) % H, l]  (sublane roll, XLU)
        return pltpu.roll(p, shift=(-da) % H, axis=0)

    def lane_shift(p, db):
        # out[i, l] reads logical column (col(l) + db) % W; the lane extent is
        # a multiple of W, so a full-lane roll realizes the circular column
        # shift exactly (lane roll, XLU).
        return pltpu.roll(p, shift=(-db) % W, axis=1)

    a = a_ref[...]
    # Total mass is conserved by the renormalization, so the full cross-lane
    # reduction is hoisted out of the per-step loop (ratio of tiled sums ==
    # ratio of true sums).
    mass_tot = jnp.sum(mass_in_ref[...], keepdims=True)          # (1, 1)

    def step(_, carry):
        mass, mx, my, fx, fy = carry
        x = a * mass
        zero = jnp.zeros_like(x)

        # ---- conv_pad(A*mass, cppn_kernel): 1 in-channel -> 2*C outputs -----
        # Streamed over (ka, kb) with separable, shared rolls: one sublane roll
        # per row offset, then lane rolls on the row-rolled plane (8 rolls
        # total); each shifted plane is accumulated immediately (short live
        # ranges, no 9-plane sx list).
        nf = [None, None, None, None]
        for da in (-1, 0, 1):
            rp = x if da == 0 else row_shift(x, da)
            for db in (-1, 0, 1):
                sp = rp if db == 0 else lane_shift(rp, db)
                ka, kb = da + 1, db + 1
                for o in range(4):
                    w = float(kw[o, ka, kb])
                    if w == 0.0:                 # skipping exact zeros is FP-exact
                        continue
                    t = w * sp
                    nf[o] = t if nf[o] is None else nf[o] + t
        nf0, nf1, nf2, nf3 = [zero if v is None else v for v in nf]

        # torch: idx = argsort(|nf[:C]| + |nf[C:]|, dim=0);
        #        z_x = gather(nf, idx)[-1]          -> nf[c*]
        #        z_y = gather(nf, idx + C - 1)[-1]  -> nf[c* + 1]   (C == 2)
        # (ties pick channel 1, matching ascending argsort order).
        pick0 = (jnp.abs(nf0) + jnp.abs(nf2)) > (jnp.abs(nf1) + jnp.abs(nf3))
        z_x = jnp.where(pick0, nf0, nf1)
        z_y = jnp.where(pick0, nf1, nf2)

        # force_norm in the torch code is computed but unused -> skipped.
        fx_n = (1.0 - fdelta) * fx + fdelta * (z_x - fx)
        fy_n = (1.0 - fdelta) * fy + fdelta * (z_y - fy)

        small = mass < 1e-8
        mx_n = jnp.where(small, 0.0, mx + fx_n * dt)
        my_n = jnp.where(small, 0.0, my + fy_n * dt)
        inv_mass = 1.0 / jnp.where(small, 1.0, mass)   # single divide for vx/vy
        vx = mx_n * inv_mass                           # == 0 where small
        vy = my_n * inv_mass

        # ---- softmax_d(temp * <dir_d, v>): logits & exps computed once ------
        logits = []
        for d in range(9):
            dx = float(dirs[d, 0])
            dy = float(dirs[d, 1])
            terms = []
            if dx != 0.0:
                terms.append(dx * vx)
            if dy != 0.0:
                terms.append(dy * vy)
            if not terms:
                logits.append(zero)
            else:
                t = terms[0]
                for extra in terms[1:]:
                    t = t + extra
                logits.append(temp * t)
        m_log = logits[0]
        for d in range(1, 9):
            m_log = jnp.maximum(m_log, logits[d])
        e = [jnp.exp(logits[d] - m_log) for d in range(9)]       # 9 EUP pushes
        denom = e[0]
        for d in range(1, 9):
            denom = denom + e[d]
        inv_denom = 1.0 / denom                                  # one divide for all 9

        # softmax output is strictly positive -> torch's where(p <= 0, 0, p)
        # clamp is a no-op and dropped.  Pre-scale once per field.
        wm = mass * inv_denom
        wx = mx_n * inv_denom
        wy = my_n * inv_denom

        # ---- "moves" conv fused with the softmax numerators -----------------
        # moves[0, d] has its single 1 at (2 - d//3, 2 - d%3).  Group the 9
        # directions by row offset: lane-roll + sum the three column terms,
        # then one sublane roll per row group (6 lane + 2 sublane rolls per
        # accumulated field; no zero-init, center group seeds the sum).
        def moves_apply(w):
            out = None
            for r in range(3):                             # row group: da = 1 - r
                part = (lane_shift(w * e[3 * r], 1)            # d%3 == 0 -> db = +1
                        + w * e[3 * r + 1]                     # d%3 == 1 -> db =  0
                        + lane_shift(w * e[3 * r + 2], -1))    # d%3 == 2 -> db = -1
                da = 1 - r
                if da != 0:
                    part = row_shift(part, da)
                out = part if out is None else out + part
            return out

        acc_mass = moves_apply(wm)
        acc_mx = moves_apply(wx)
        acc_my = moves_apply(wy)

        # ---- mass renormalization (no zero guard: matches torch) ------------
        ratio = mass_tot / jnp.sum(acc_mass, keepdims=True)
        return (acc_mass * ratio, acc_mx, acc_my, fx_n, fy_n)

    init = (mass_in_ref[...], mom_in_ref[0], mom_in_ref[1],
            frc_in_ref[0], frc_in_ref[1])
    new_mass, new_mx, new_my, new_fx, new_fy = lax.fori_loop(
        0, num_steps, step, init, unroll=num_steps <= 4)

    mass_ref[...] = new_mass
    mom_ref[0] = new_mx
    mom_ref[1] = new_my
    frc_ref[0] = new_fx
    frc_ref[1] = new_fy


def rule_forward(mass, momentum, force, A, dt=1.0, temp=0.1, fdelta=0.1,
                 num_steps=1):
    """Pallas implementation of Rule.forward.

    mass, A: (1, 1, H, W); momentum, force: (2, 1, H, W).  Returns
    (mass (1,1,H,W), momentum (2,1,H,W), force (2,1,H,W)), all float32.
    num_steps > 1 fuses that many applications of Rule.forward (A held fixed)
    into one pallas_call (in-kernel step loop); num_steps == 1 is exactly one
    forward pass.
    """
    H, W = mass.shape[-2:]
    assert num_steps >= 1
    assert H % 8 == 0 and _LANE % W == 0, (
        "lane-tiled implementation needs H % 8 == 0 and 128 % W == 0")
    reps = _LANE // W
    lw = W * reps                                  # == 128

    def tile_last(x):
        return jnp.tile(x, (1,) * (x.ndim - 1) + (reps,))

    mass_t = tile_last(jnp.asarray(mass, jnp.float32).reshape(H, W))
    a_t = tile_last(jnp.asarray(A, jnp.float32).reshape(H, W))
    mom_t = tile_last(jnp.asarray(momentum, jnp.float32).reshape(2, H, W))
    frc_t = tile_last(jnp.asarray(force, jnp.float32).reshape(2, H, W))

    kern = functools.partial(
        _rule_kernel, kw=_KW, dirs=_DIRS, dt=float(dt), temp=float(temp),
        fdelta=float(fdelta), w_logical=W, num_steps=int(num_steps))

    spec2d = pl.BlockSpec((H, lw), lambda t: (0, 0))
    spec3d = pl.BlockSpec((2, H, lw), lambda t: (0, 0, 0))

    mass_o, mom_o, frc_o = pl.pallas_call(
        kern,
        out_shape=(jax.ShapeDtypeStruct((H, lw), jnp.float32),
                   jax.ShapeDtypeStruct((2, H, lw), jnp.float32),
                   jax.ShapeDtypeStruct((2, H, lw), jnp.float32)),
        grid=(1,),
        in_specs=[spec2d, spec3d, spec3d, spec2d],
        out_specs=(spec2d, spec3d, spec3d),
        compiler_params=pltpu.CompilerParams(
            dimension_semantics=("arbitrary",)),
    )(mass_t, mom_t, frc_t, a_t)

    return (mass_o[:, :W].reshape(1, 1, H, W),
            mom_o[:, :, :W].reshape(2, 1, H, W),
            frc_o[:, :, :W].reshape(2, 1, H, W))


def _rule_forward_ref(mass, momentum, force, A, dt=1.0, temp=0.1, fdelta=0.1):
    """Pure-JAX reference mirroring the torch Rule.forward (same placeholder
    CPPN weights), used only for a correctness check in __main__."""
    H, W = mass.shape[-2:]
    m = jnp.asarray(mass, jnp.float32).reshape(H, W)
    a = jnp.asarray(A, jnp.float32).reshape(H, W)
    mom = jnp.asarray(momentum, jnp.float32).reshape(2, H, W)
    frc = jnp.asarray(force, jnp.float32).reshape(2, H, W)

    def shift(p, ka, kb):
        return jnp.roll(p, (-(ka - 1), -(kb - 1)), axis=(0, 1))

    x = a * m
    nf = []
    for o in range(2 * _CHANNELS):
        acc = None
        for ka in range(3):
            for kb in range(3):
                w = float(_KW[o, ka, kb])
                if w == 0.0:
                    continue
                term = w * shift(x, ka, kb)
                acc = term if acc is None else acc + term
        nf.append(jnp.zeros_like(x) if acc is None else acc)

    pick0 = (jnp.abs(nf[0]) + jnp.abs(nf[2])) > (jnp.abs(nf[1]) + jnp.abs(nf[3]))
    z_x = jnp.where(pick0, nf[0], nf[1])
    z_y = jnp.where(pick0, nf[1], nf[2])
    new_frc = jnp.stack([z_x, z_y])
    frc = (1.0 - fdelta) * frc + fdelta * (new_frc - frc)

    small = (m < 1e-8)[None]
    mom = jnp.where(small, 0.0, mom + frc * dt)
    vel = jnp.where(small, 0.0, mom / m[None])

    logits = temp * jnp.einsum("dn,nhw->dhw", jnp.asarray(_DIRS), vel)
    prop = jax.nn.softmax(logits, axis=0)                 # (9, H, W)

    mass_tot = m.sum()
    mass_prop = m[None] * prop
    mom_prop = mom[:, None] * prop[None]                  # (2, 9, H, W)

    def moves(planes):                                    # (9, H, W) -> (H, W)
        out = shift(planes[0], 2, 2)
        for d in range(1, 9):
            out = out + shift(planes[d], 2 - d // 3, 2 - d % 3)
        return out

    new_m = moves(mass_prop)
    new_mom = jnp.stack([moves(mom_prop[0]), moves(mom_prop[1])])
    new_m = mass_tot * new_m / new_m.sum()
    return (new_m.reshape(1, 1, H, W), new_mom.reshape(2, 1, H, W),
            frc.reshape(2, 1, H, W))


if __name__ == "__main__":
    key = jax.random.PRNGKey(0)
    H = W = 16
    k1, k2, k3, k4 = jax.random.split(key, 4)
    mass = jax.random.uniform(k1, (1, 1, H, W), jnp.float32, minval=0.1, maxval=1.0)
    momentum = 0.1 * jax.random.normal(k2, (2, 1, H, W), jnp.float32)
    force = 0.1 * jax.random.normal(k3, (2, 1, H, W), jnp.float32)
    A = jax.random.uniform(k4, (1, 1, H, W), jnp.float32)

    # --- single step (== Rule.forward), checked against the pure-JAX reference
    m1, p1, f1 = rule_forward(mass, momentum, force, A)
    jax.block_until_ready((m1, p1, f1))
    assert m1.shape == (1, 1, H, W)
    assert p1.shape == (2, 1, H, W)
    assert f1.shape == (2, 1, H, W)
    r1 = _rule_forward_ref(mass, momentum, force, A)
    for got, want in zip((m1, p1, f1), r1):
        assert np.allclose(np.asarray(got), np.asarray(want),
                           rtol=1e-4, atol=1e-5)

    # --- fused 3-step rollout in ONE pallas_call ~= 3 chained single steps
    # (tolerance covers the fp drift from the hoisted total-mass reduction)
    ma, pa, fa = m1, p1, f1
    for _ in range(2):
        ma, pa, fa = rule_forward(ma, pa, fa, A)
    mb, pb, fb = rule_forward(mass, momentum, force, A, num_steps=3)
    jax.block_until_ready((mb, pb, fb))
    for got, want in zip((mb, pb, fb), (ma, pa, fa)):
        assert np.allclose(np.asarray(got), np.asarray(want),
                           rtol=1e-4, atol=1e-5)
    assert bool(jnp.isfinite(mb).all())

    print("KERNEL_OK")
</pallas_src>

<mosaic_0001>
module attributes {stable_mosaic.version = 11 : i64} {
  func.func @_rule_kernel(%arg0: i32, %arg1: memref<16x128xf32, #tpu.memory_space<vmem>>, %arg2: memref<2x16x128xf32, #tpu.memory_space<vmem>>, %arg3: memref<2x16x128xf32, #tpu.memory_space<vmem>>, %arg4: memref<16x128xf32, #tpu.memory_space<vmem>>, %arg5: memref<16x128xf32, #tpu.memory_space<vmem>>, %arg6: memref<2x16x128xf32, #tpu.memory_space<vmem>>, %arg7: memref<2x16x128xf32, #tpu.memory_space<vmem>>) attributes {dimension_semantics = [#tpu.dimension_semantics<arbitrary>], iteration_bounds = array<i64: 1>, scalar_prefetch = 0 : i64, scratch_operands = 0 : i64, tpu.core_type = #tpu.core_type<tc>, window_params = [{pipeline_mode = #tpu.pipeline_mode<synchronous>, transform_indices = @transform_0, window_bounds = array<i64: 16, 128>}, {pipeline_mode = #tpu.pipeline_mode<synchronous>, transform_indices = @transform_1, window_bounds = array<i64: 2, 16, 128>}, {pipeline_mode = #tpu.pipeline_mode<synchronous>, transform_indices = @transform_2, window_bounds = array<i64: 2, 16, 128>}, {pipeline_mode = #tpu.pipeline_mode<synchronous>, transform_indices = @transform_3, window_bounds = array<i64: 16, 128>}, {pipeline_mode = #tpu.pipeline_mode<synchronous>, transform_indices = @transform_4, window_bounds = array<i64: 16, 128>}, {pipeline_mode = #tpu.pipeline_mode<synchronous>, transform_indices = @transform_5, window_bounds = array<i64: 2, 16, 128>}, {pipeline_mode = #tpu.pipeline_mode<synchronous>, transform_indices = @transform_6, window_bounds = array<i64: 2, 16, 128>}]} {
    %c0 = arith.constant 0 : index
    %c0_0 = arith.constant 0 : index
    %0 = vector.load %arg4[%c0, %c0_0] : memref<16x128xf32, #tpu.memory_space<vmem>>, vector<16x128xf32>
    %c0_1 = arith.constant 0 : index
    %c0_2 = arith.constant 0 : index
    %1 = vector.load %arg1[%c0_1, %c0_2] : memref<16x128xf32, #tpu.memory_space<vmem>>, vector<16x128xf32>
    %2 = vector.shape_cast %1 : vector<16x128xf32> to vector<1x16x128xf32>
    %cst = arith.constant dense<0.000000e+00> : vector<1xf32>
    %3 = vector.multi_reduction <add>, %2, %cst [1, 2] : vector<1x16x128xf32> to vector<1xf32>
    %4 = vector.shape_cast %3 : vector<1xf32> to vector<1x1x1xf32>
    %5 = vector.extract %4[0, 0, 0] : f32 from vector<1x1x1xf32>
    %6 = vector.broadcast %5 : f32 to vector<1x1xf32>
    %c0_3 = arith.constant 0 : index
    %c0_4 = arith.constant 0 : index
    %7 = vector.load %arg1[%c0_3, %c0_4] : memref<16x128xf32, #tpu.memory_space<vmem>>, vector<16x128xf32>
    %c0_5 = arith.constant 0 : index
    %c0_6 = arith.constant 0 : index
    %c0_7 = arith.constant 0 : index
    %8 = vector.load %arg2[%c0_5, %c0_6, %c0_7] : memref<2x16x128xf32, #tpu.memory_space<vmem>>, vector<1x16x128xf32>
    %9 = vector.shape_cast %8 : vector<1x16x128xf32> to vector<16x128xf32>
    %c1 = arith.constant 1 : index
    %c0_8 = arith.constant 0 : index
    %c0_9 = arith.constant 0 : index
    %10 = vector.load %arg2[%c1, %c0_8, %c0_9] : memref<2x16x128xf32, #tpu.memory_space<vmem>>, vector<1x16x128xf32>
    %11 = vector.shape_cast %10 : vector<1x16x128xf32> to vector<16x128xf32>
    %c0_10 = arith.constant 0 : index
    %c0_11 = arith.constant 0 : index
    %c0_12 = arith.constant 0 : index
    %12 = vector.load %arg3[%c0_10, %c0_11, %c0_12] : memref<2x16x128xf32, #tpu.memory_space<vmem>>, vector<1x16x128xf32>
    %13 = vector.shape_cast %12 : vector<1x16x128xf32> to vector<16x128xf32>
    %c1_13 = arith.constant 1 : index
    %c0_14 = arith.constant 0 : index
    %c0_15 = arith.constant 0 : index
    %14 = vector.load %arg3[%c1_13, %c0_14, %c0_15] : memref<2x16x128xf32, #tpu.memory_space<vmem>>, vector<1x16x128xf32>
    %15 = vector.shape_cast %14 : vector<1x16x128xf32> to vector<16x128xf32>
    %c0_i32 = arith.constant 0 : i32
    %16 = arith.mulf %0, %7 : vector<16x128xf32>
    %cst_16 = arith.constant 0.000000e+00 : f32
    %17 = vector.broadcast %cst_16 : f32 to vector<16x128xf32>
    %c1_i32 = arith.constant 1 : i32
    %18 = tpu.dynamic_rotate %16 by %c1_i32 dim 0 : vector<16x128xf32>, i32 -> vector<16x128xf32>
    %c1_i32_17 = arith.constant 1 : i32
    %19 = tpu.dynamic_rotate %18 by %c1_i32_17 dim 1 : vector<16x128xf32>, i32 -> vector<16x128xf32>
    %cst_18 = arith.constant -0.0792144909 : f32
    %20 = vector.broadcast %cst_18 : f32 to vector<16x128xf32>
    %21 = arith.mulf %20, %19 : vector<16x128xf32>
    %cst_19 = arith.constant 0.633819997 : f32
    %22 = vector.broadcast %cst_19 : f32 to vector<16x128xf32>
    %23 = arith.mulf %22, %19 : vector<16x128xf32>
    %cst_20 = arith.constant -0.0792144909 : f32
    %24 = vector.broadcast %cst_20 : f32 to vector<16x128xf32>
    %25 = arith.mulf %24, %19 : vector<16x128xf32>
    %cst_21 = arith.constant 0.633819997 : f32
    %26 = vector.broadcast %cst_21 : f32 to vector<16x128xf32>
    %27 = arith.mulf %26, %19 : vector<16x128xf32>
    %cst_22 = arith.constant 0.650003672 : f32
    %28 = vector.broadcast %cst_22 : f32 to vector<16x128xf32>
    %29 = arith.mulf %28, %18 : vector<16x128xf32>
    %30 = arith.addf %21, %29 : vector<16x128xf32>
    %cst_23 = arith.constant -0.268162787 : f32
    %31 = vector.broadcast %cst_23 : f32 to vector<16x128xf32>
    %32 = arith.mulf %31, %18 : vector<16x128xf32>
    %33 = arith.addf %23, %32 : vector<16x128xf32>
    %c15_i32 = arith.constant 15 : i32
    %34 = tpu.dynamic_rotate %18 by %c15_i32 dim 1 : vector<16x128xf32>, i32 -> vector<16x128xf32>
    %cst_24 = arith.constant -0.26871407 : f32
    %35 = vector.broadcast %cst_24 : f32 to vector<16x128xf32>
    %36 = arith.mulf %35, %34 : vector<16x128xf32>
    %37 = arith.addf %30, %36 : vector<16x128xf32>
    %cst_25 = arith.constant -0.485181779 : f32
    %38 = vector.broadcast %cst_25 : f32 to vector<16x128xf32>
    %39 = arith.mulf %38, %34 : vector<16x128xf32>
    %40 = arith.addf %33, %39 : vector<16x128xf32>
    %cst_26 = arith.constant 0.26871407 : f32
    %41 = vector.broadcast %cst_26 : f32 to vector<16x128xf32>
    %42 = arith.mulf %41, %34 : vector<16x128xf32>
    %43 = arith.addf %25, %42 : vector<16x128xf32>
    %cst_27 = arith.constant 0.485181779 : f32
    %44 = vector.broadcast %cst_27 : f32 to vector<16x128xf32>
    %45 = arith.mulf %44, %34 : vector<16x128xf32>
    %46 = arith.addf %27, %45 : vector<16x128xf32>
    %c1_i32_28 = arith.constant 1 : i32
    %47 = tpu.dynamic_rotate %16 by %c1_i32_28 dim 1 : vector<16x128xf32>, i32 -> vector<16x128xf32>
    %cst_29 = arith.constant 0.650003672 : f32
    %48 = vector.broadcast %cst_29 : f32 to vector<16x128xf32>
    %49 = arith.mulf %48, %47 : vector<16x128xf32>
    %50 = arith.addf %43, %49 : vector<16x128xf32>
    %cst_30 = arith.constant -0.268162787 : f32
    %51 = vector.broadcast %cst_30 : f32 to vector<16x128xf32>
    %52 = arith.mulf %51, %47 : vector<16x128xf32>
    %53 = arith.addf %46, %52 : vector<16x128xf32>
    %c15_i32_31 = arith.constant 15 : i32
    %54 = tpu.dynamic_rotate %16 by %c15_i32_31 dim 1 : vector<16x128xf32>, i32 -> vector<16x128xf32>
    %cst_32 = arith.constant -0.650003672 : f32
    %55 = vector.broadcast %cst_32 : f32 to vector<16x128xf32>
    %56 = arith.mulf %55, %54 : vector<16x128xf32>
    %57 = arith.addf %50, %56 : vector<16x128xf32>
    %cst_33 = arith.constant 0.268162787 : f32
    %58 = vector.broadcast %cst_33 : f32 to vector<16x128xf32>
    %59 = arith.mulf %58, %54 : vector<16x128xf32>
    %60 = arith.addf %53, %59 : vector<16x128xf32>
    %c15_i32_34 = arith.constant 15 : i32
    %61 = tpu.dynamic_rotate %16 by %c15_i32_34 dim 0 : vector<16x128xf32>, i32 -> vector<16x128xf32>
    %c1_i32_35 = arith.constant 1 : i32
    %62 = tpu.dynamic_rotate %61 by %c1_i32_35 dim 1 : vector<16x128xf32>, i32 -> vector<16x128xf32>
    %cst_36 = arith.constant 0.26871407 : f32
    %63 = vector.broadcast %cst_36 : f32 to vector<16x128xf32>
    %64 = arith.mulf %63, %62 : vector<16x128xf32>
    %65 = arith.addf %37, %64 : vector<16x128xf32>
    %cst_37 = arith.constant 0.485181779 : f32
    %66 = vector.broadcast %cst_37 : f32 to vector<16x128xf32>
    %67 = arith.mulf %66, %62 : vector<16x128xf32>
    %68 = arith.addf %40, %67 : vector<16x128xf32>
    %cst_38 = arith.constant -0.26871407 : f32
    %69 = vector.broadcast %cst_38 : f32 to vector<16x128xf32>
    %70 = arith.mulf %69, %62 : vector<16x128xf32>
    %71 = arith.addf %57, %70 : vector<16x128xf32>
    %cst_39 = arith.constant -0.485181779 : f32
    %72 = vector.broadcast %cst_39 : f32 to vector<16x128xf32>
    %73 = arith.mulf %72, %62 : vector<16x128xf32>
    %74 = arith.addf %60, %73 : vector<16x128xf32>
    %cst_40 = arith.constant -0.650003672 : f32
    %75 = vector.broadcast %cst_40 : f32 to vector<16x128xf32>
    %76 = arith.mulf %75, %61 : vector<16x128xf32>
    %77 = arith.addf %65, %76 : vector<16x128xf32>
    %cst_41 = arith.constant 0.268162787 : f32
    %78 = vector.broadcast %cst_41 : f32 to vector<16x128xf32>
    %79 = arith.mulf %78, %61 : vector<16x128xf32>
    %80 = arith.addf %68, %79 : vector<16x128xf32>
    %c15_i32_42 = arith.constant 15 : i32
    %81 = tpu.dynamic_rotate %61 by %c15_i32_42 dim 1 : vector<16x128xf32>, i32 -> vector<16x128xf32>
    %cst_43 = arith.constant 0.0792144909 : f32
    %82 = vector.broadcast %cst_43 : f32 to vector<16x128xf32>
    %83 = arith.mulf %82, %81 : vector<16x128xf32>
    %84 = arith.addf %77, %83 : vector<16x128xf32>
    %cst_44 = arith.constant -0.633819997 : f32
    %85 = vector.broadcast %cst_44 : f32 to vector<16x128xf32>
    %86 = arith.mulf %85, %81 : vector<16x128xf32>
    %87 = arith.addf %80, %86 : vector<16x128xf32>
    %cst_45 = arith.constant 0.0792144909 : f32
    %88 = vector.broadcast %cst_45 : f32 to vector<16x128xf32>
    %89 = arith.mulf %88, %81 : vector<16x128xf32>
    %90 = arith.addf %71, %89 : vector<16x128xf32>
    %cst_46 = arith.constant -0.633819997 : f32
    %91 = vector.broadcast %cst_46 : f32 to vector<16x128xf32>
    %92 = arith.mulf %91, %81 : vector<16x128xf32>
    %93 = arith.addf %74, %92 : vector<16x128xf32>
    %94 = math.absf %84 : vector<16x128xf32>
    %95 = math.absf %90 : vector<16x128xf32>
    %96 = arith.addf %94, %95 : vector<16x128xf32>
    %97 = math.absf %87 : vector<16x128xf32>
    %98 = math.absf %93 : vector<16x128xf32>
    %99 = arith.addf %97, %98 : vector<16x128xf32>
    %100 = arith.cmpf ogt, %96, %99 : vector<16x128xf32>
    %101 = arith.select %100, %84, %87 : vector<16x128xi1>, vector<16x128xf32>
    %102 = arith.select %100, %87, %90 : vector<16x128xi1>, vector<16x128xf32>
    %cst_47 = arith.constant 0.899999976 : f32
    %103 = vector.broadcast %cst_47 : f32 to vector<16x128xf32>
    %104 = arith.mulf %103, %13 : vector<16x128xf32>
    %105 = arith.subf %101, %13 : vector<16x128xf32>
    %cst_48 = arith.constant 1.000000e-01 : f32
    %106 = vector.broadcast %cst_48 : f32 to vector<16x128xf32>
    %107 = arith.mulf %106, %105 : vector<16x128xf32>
    %108 = arith.addf %104, %107 : vector<16x128xf32>
    %cst_49 = arith.constant 0.899999976 : f32
    %109 = vector.broadcast %cst_49 : f32 to vector<16x128xf32>
    %110 = arith.mulf %109, %15 : vector<16x128xf32>
    %111 = arith.subf %102, %15 : vector<16x128xf32>
    %cst_50 = arith.constant 1.000000e-01 : f32
    %112 = vector.broadcast %cst_50 : f32 to vector<16x128xf32>
    %113 = arith.mulf %112, %111 : vector<16x128xf32>
    %114 = arith.addf %110, %113 : vector<16x128xf32>
    %cst_51 = arith.constant 9.99999993E-9 : f32
    %115 = vector.broadcast %cst_51 : f32 to vector<16x128xf32>
    %116 = arith.cmpf olt, %7, %115 : vector<16x128xf32>
    %cst_52 = arith.constant 1.000000e+00 : f32
    %117 = vector.broadcast %cst_52 : f32 to vector<16x128xf32>
    %118 = arith.mulf %108, %117 : vector<16x128xf32>
    %119 = arith.addf %9, %118 : vector<16x128xf32>
    %cst_53 = arith.constant 0.000000e+00 : f32
    %120 = vector.broadcast %cst_53 : f32 to vector<16x128xf32>
    %121 = arith.select %116, %120, %119 : vector<16x128xi1>, vector<16x128xf32>
    %cst_54 = arith.constant 1.000000e+00 : f32
    %122 = vector.broadcast %cst_54 : f32 to vector<16x128xf32>
    %123 = arith.mulf %114, %122 : vector<16x128xf32>
    %124 = arith.addf %11, %123 : vector<16x128xf32>
    %cst_55 = arith.constant 0.000000e+00 : f32
    %125 = vector.broadcast %cst_55 : f32 to vector<16x128xf32>
    %126 = arith.select %116, %125, %124 : vector<16x128xi1>, vector<16x128xf32>
    %cst_56 = arith.constant 1.000000e+00 : f32
    %127 = vector.broadcast %cst_56 : f32 to vector<16x128xf32>
    %128 = arith.select %116, %127, %7 : vector<16x128xi1>, vector<16x128xf32>
    %cst_57 = arith.constant 1.000000e+00 : f32
    %129 = vector.broadcast %cst_57 : f32 to vector<16x128xf32>
    %130 = arith.divf %129, %128 : vector<16x128xf32>
    %131 = arith.mulf %121, %130 : vector<16x128xf32>
    %132 = arith.mulf %126, %130 : vector<16x128xf32>
    %cst_58 = arith.constant 0.707106769 : f32
    %133 = vector.broadcast %cst_58 : f32 to vector<16x128xf32>
    %134 = arith.mulf %133, %131 : vector<16x128xf32>
    %cst_59 = arith.constant 0.707106769 : f32
    %135 = vector.broadcast %cst_59 : f32 to vector<16x128xf32>
    %136 = arith.mulf %135, %132 : vector<16x128xf32>
    %137 = arith.addf %134, %136 : vector<16x128xf32>
    %cst_60 = arith.constant 1.000000e-01 : f32
    %138 = vector.broadcast %cst_60 : f32 to vector<16x128xf32>
    %139 = arith.mulf %138, %137 : vector<16x128xf32>
    %cst_61 = arith.constant 1.000000e+00 : f32
    %140 = vector.broadcast %cst_61 : f32 to vector<16x128xf32>
    %141 = arith.mulf %140, %132 : vector<16x128xf32>
    %cst_62 = arith.constant 1.000000e-01 : f32
    %142 = vector.broadcast %cst_62 : f32 to vector<16x128xf32>
    %143 = arith.mulf %142, %141 : vector<16x128xf32>
    %cst_63 = arith.constant -0.707106769 : f32
    %144 = vector.broadcast %cst_63 : f32 to vector<16x128xf32>
    %145 = arith.mulf %144, %131 : vector<16x128xf32>
    %cst_64 = arith.constant 0.707106769 : f32
    %146 = vector.broadcast %cst_64 : f32 to vector<16x128xf32>
    %147 = arith.mulf %146, %132 : vector<16x128xf32>
    %148 = arith.addf %145, %147 : vector<16x128xf32>
    %cst_65 = arith.constant 1.000000e-01 : f32
    %149 = vector.broadcast %cst_65 : f32 to vector<16x128xf32>
    %150 = arith.mulf %149, %148 : vector<16x128xf32>
    %cst_66 = arith.constant 1.000000e+00 : f32
    %151 = vector.broadcast %cst_66 : f32 to vector<16x128xf32>
    %152 = arith.mulf %151, %131 : vector<16x128xf32>
    %cst_67 = arith.constant 1.000000e-01 : f32
    %153 = vector.broadcast %cst_67 : f32 to vector<16x128xf32>
    %154 = arith.mulf %153, %152 : vector<16x128xf32>
    %cst_68 = arith.constant -1.000000e+00 : f32
    %155 = vector.broadcast %cst_68 : f32 to vector<16x128xf32>
    %156 = arith.mulf %155, %131 : vector<16x128xf32>
    %cst_69 = arith.constant 1.000000e-01 : f32
    %157 = vector.broadcast %cst_69 : f32 to vector<16x128xf32>
    %158 = arith.mulf %157, %156 : vector<16x128xf32>
    %cst_70 = arith.constant 0.707106769 : f32
    %159 = vector.broadcast %cst_70 : f32 to vector<16x128xf32>
    %160 = arith.mulf %159, %131 : vector<16x128xf32>
    %cst_71 = arith.constant -0.707106769 : f32
    %161 = vector.broadcast %cst_71 : f32 to vector<16x128xf32>
    %162 = arith.mulf %161, %132 : vector<16x128xf32>
    %163 = arith.addf %160, %162 : vector<16x128xf32>
    %cst_72 = arith.constant 1.000000e-01 : f32
    %164 = vector.broadcast %cst_72 : f32 to vector<16x128xf32>
    %165 = arith.mulf %164, %163 : vector<16x128xf32>
    %cst_73 = arith.constant -1.000000e+00 : f32
    %166 = vector.broadcast %cst_73 : f32 to vector<16x128xf32>
    %167 = arith.mulf %166, %132 : vector<16x128xf32>
    %cst_74 = arith.constant 1.000000e-01 : f32
    %168 = vector.broadcast %cst_74 : f32 to vector<16x128xf32>
    %169 = arith.mulf %168, %167 : vector<16x128xf32>
    %cst_75 = arith.constant -0.707106769 : f32
    %170 = vector.broadcast %cst_75 : f32 to vector<16x128xf32>
    %171 = arith.mulf %170, %131 : vector<16x128xf32>
    %cst_76 = arith.constant -0.707106769 : f32
    %172 = vector.broadcast %cst_76 : f32 to vector<16x128xf32>
    %173 = arith.mulf %172, %132 : vector<16x128xf32>
    %174 = arith.addf %171, %173 : vector<16x128xf32>
    %cst_77 = arith.constant 1.000000e-01 : f32
    %175 = vector.broadcast %cst_77 : f32 to vector<16x128xf32>
    %176 = arith.mulf %175, %174 : vector<16x128xf32>
    %177 = arith.maximumf %139, %143 : vector<16x128xf32>
    %178 = arith.maximumf %177, %150 : vector<16x128xf32>
    %179 = arith.maximumf %178, %154 : vector<16x128xf32>
    %180 = arith.maximumf %179, %17 : vector<16x128xf32>
    %181 = arith.maximumf %180, %158 : vector<16x128xf32>
    %182 = arith.maximumf %181, %165 : vector<16x128xf32>
    %183 = arith.maximumf %182, %169 : vector<16x128xf32>
    %184 = arith.maximumf %183, %176 : vector<16x128xf32>
    %185 = arith.subf %139, %184 : vector<16x128xf32>
    %186 = math.exp %185 : vector<16x128xf32>
    %187 = arith.subf %143, %184 : vector<16x128xf32>
    %188 = math.exp %187 : vector<16x128xf32>
    %189 = arith.subf %150, %184 : vector<16x128xf32>
    %190 = math.exp %189 : vector<16x128xf32>
    %191 = arith.subf %154, %184 : vector<16x128xf32>
    %192 = math.exp %191 : vector<16x128xf32>
    %193 = arith.subf %17, %184 : vector<16x128xf32>
    %194 = math.exp %193 : vector<16x128xf32>
    %195 = arith.subf %158, %184 : vector<16x128xf32>
    %196 = math.exp %195 : vector<16x128xf32>
    %197 = arith.subf %165, %184 : vector<16x128xf32>
    %198 = math.exp %197 : vector<16x128xf32>
    %199 = arith.subf %169, %184 : vector<16x128xf32>
    %200 = math.exp %199 : vector<16x128xf32>
    %201 = arith.subf %176, %184 : vector<16x128xf32>
    %202 = math.exp %201 : vector<16x128xf32>
    %203 = arith.addf %186, %188 : vector<16x128xf32>
    %204 = arith.addf %203, %190 : vector<16x128xf32>
    %205 = arith.addf %204, %192 : vector<16x128xf32>
    %206 = arith.addf %205, %194 : vector<16x128xf32>
    %207 = arith.addf %206, %196 : vector<16x128xf32>
    %208 = arith.addf %207, %198 : vector<16x128xf32>
    %209 = arith.addf %208, %200 : vector<16x128xf32>
    %210 = arith.addf %209, %202 : vector<16x128xf32>
    %cst_78 = arith.constant 1.000000e+00 : f32
    %211 = vector.broadcast %cst_78 : f32 to vector<16x128xf32>
    %212 = arith.divf %211, %210 : vector<16x128xf32>
    %213 = arith.mulf %7, %212 : vector<16x128xf32>
    %214 = arith.mulf %121, %212 : vector<16x128xf32>
    %215 = arith.mulf %126, %212 : vector<16x128xf32>
    %216 = arith.mulf %213, %186 : vector<16x128xf32>
    %c15_i32_79 = arith.constant 15 : i32
    %217 = tpu.dynamic_rotate %216 by %c15_i32_79 dim 1 : vector<16x128xf32>, i32 -> vector<16x128xf32>
    %218 = arith.mulf %213, %188 : vector<16x128xf32>
    %219 = arith.addf %217, %218 : vector<16x128xf32>
    %220 = arith.mulf %213, %190 : vector<16x128xf32>
    %c1_i32_80 = arith.constant 1 : i32
    %221 = tpu.dynamic_rotate %220 by %c1_i32_80 dim 1 : vector<16x128xf32>, i32 -> vector<16x128xf32>
    %222 = arith.addf %219, %221 : vector<16x128xf32>
    %c15_i32_81 = arith.constant 15 : i32
    %223 = tpu.dynamic_rotate %222 by %c15_i32_81 dim 0 : vector<16x128xf32>, i32 -> vector<16x128xf32>
    %224 = arith.mulf %213, %192 : vector<16x128xf32>
    %c15_i32_82 = arith.constant 15 : i32
    %225 = tpu.dynamic_rotate %224 by %c15_i32_82 dim 1 : vector<16x128xf32>, i32 -> vector<16x128xf32>
    %226 = arith.mulf %213, %194 : vector<16x128xf32>
    %227 = arith.addf %225, %226 : vector<16x128xf32>
    %228 = arith.mulf %213, %196 : vector<16x128xf32>
    %c1_i32_83 = arith.constant 1 : i32
    %229 = tpu.dynamic_rotate %228 by %c1_i32_83 dim 1 : vector<16x128xf32>, i32 -> vector<16x128xf32>
    %230 = arith.addf %227, %229 : vector<16x128xf32>
    %231 = arith.addf %223, %230 : vector<16x128xf32>
    %232 = arith.mulf %213, %198 : vector<16x128xf32>
    %c15_i32_84 = arith.constant 15 : i32
    %233 = tpu.dynamic_rotate %232 by %c15_i32_84 dim 1 : vector<16x128xf32>, i32 -> vector<16x128xf32>
    %234 = arith.mulf %213, %200 : vector<16x128xf32>
    %235 = arith.addf %233, %234 : vector<16x128xf32>
    %236 = arith.mulf %213, %202 : vector<16x128xf32>
    %c1_i32_85 = arith.constant 1 : i32
    %237 = tpu.dynamic_rotate %236 by %c1_i32_85 dim 1 : vector<16x128xf32>, i32 -> vector<16x128xf32>
    %238 = arith.addf %235, %237 : vector<16x128xf32>
    %c1_i32_86 = arith.constant 1 : i32
    %239 = tpu.dynamic_rotate %238 by %c1_i32_86 dim 0 : vector<16x128xf32>, i32 -> vector<16x128xf32>
    %240 = arith.addf %231, %239 : vector<16x128xf32>
    %241 = arith.mulf %214, %186 : vector<16x128xf32>
    %c15_i32_87 = arith.constant 15 : i32
    %242 = tpu.dynamic_rotate %241 by %c15_i32_87 dim 1 : vector<16x128xf32>, i32 -> vector<16x128xf32>
    %243 = arith.mulf %214, %188 : vector<16x128xf32>
    %244 = arith.addf %242, %243 : vector<16x128xf32>
    %245 = arith.mulf %214, %190 : vector<16x128xf32>
    %c1_i32_88 = arith.constant 1 : i32
    %246 = tpu.dynamic_rotate %245 by %c1_i32_88 dim 1 : vector<16x128xf32>, i32 -> vector<16x128xf32>
    %247 = arith.addf %244, %246 : vector<16x128xf32>
    %c15_i32_89 = arith.constant 15 : i32
    %248 = tpu.dynamic_rotate %247 by %c15_i32_89 dim 0 : vector<16x128xf32>, i32 -> vector<16x128xf32>
    %249 = arith.mulf %214, %192 : vector<16x128xf32>
    %c15_i32_90 = arith.constant 15 : i32
    %250 = tpu.dynamic_rotate %249 by %c15_i32_90 dim 1 : vector<16x128xf32>, i32 -> vector<16x128xf32>
    %251 = arith.mulf %214, %194 : vector<16x128xf32>
    %252 = arith.addf %250, %251 : vector<16x128xf32>
    %253 = arith.mulf %214, %196 : vector<16x128xf32>
    %c1_i32_91 = arith.constant 1 : i32
    %254 = tpu.dynamic_rotate %253 by %c1_i32_91 dim 1 : vector<16x128xf32>, i32 -> vector<16x128xf32>
    %255 = arith.addf %252, %254 : vector<16x128xf32>
    %256 = arith.addf %248, %255 : vector<16x128xf32>
    %257 = arith.mulf %214, %198 : vector<16x128xf32>
    %c15_i32_92 = arith.constant 15 : i32
    %258 = tpu.dynamic_rotate %257 by %c15_i32_92 dim 1 : vector<16x128xf32>, i32 -> vector<16x128xf32>
    %259 = arith.mulf %214, %200 : vector<16x128xf32>
    %260 = arith.addf %258, %259 : vector<16x128xf32>
    %261 = arith.mulf %214, %202 : vector<16x128xf32>
    %c1_i32_93 = arith.constant 1 : i32
    %262 = tpu.dynamic_rotate %261 by %c1_i32_93 dim 1 : vector<16x128xf32>, i32 -> vector<16x128xf32>
    %263 = arith.addf %260, %262 : vector<16x128xf32>
    %c1_i32_94 = arith.constant 1 : i32
    %264 = tpu.dynamic_rotate %263 by %c1_i32_94 dim 0 : vector<16x128xf32>, i32 -> vector<16x128xf32>
    %265 = arith.addf %256, %264 : vector<16x128xf32>
    %266 = arith.mulf %215, %186 : vector<16x128xf32>
    %c15_i32_95 = arith.constant 15 : i32
    %267 = tpu.dynamic_rotate %266 by %c15_i32_95 dim 1 : vector<16x128xf32>, i32 -> vector<16x128xf32>
    %268 = arith.mulf %215, %188 : vector<16x128xf32>
    %269 = arith.addf %267, %268 : vector<16x128xf32>
    %270 = arith.mulf %215, %190 : vector<16x128xf32>
    %c1_i32_96 = arith.constant 1 : i32
    %271 = tpu.dynamic_rotate %270 by %c1_i32_96 dim 1 : vector<16x128xf32>, i32 -> vector<16x128xf32>
    %272 = arith.addf %269, %271 : vector<16x128xf32>
    %c15_i32_97 = arith.constant 15 : i32
    %273 = tpu.dynamic_rotate %272 by %c15_i32_97 dim 0 : vector<16x128xf32>, i32 -> vector<16x128xf32>
    %274 = arith.mulf %215, %192 : vector<16x128xf32>
    %c15_i32_98 = arith.constant 15 : i32
    %275 = tpu.dynamic_rotate %274 by %c15_i32_98 dim 1 : vector<16x128xf32>, i32 -> vector<16x128xf32>
    %276 = arith.mulf %215, %194 : vector<16x128xf32>
    %277 = arith.addf %275, %276 : vector<16x128xf32>
    %278 = arith.mulf %215, %196 : vector<16x128xf32>
    %c1_i32_99 = arith.constant 1 : i32
    %279 = tpu.dynamic_rotate %278 by %c1_i32_99 dim 1 : vector<16x128xf32>, i32 -> vector<16x128xf32>
    %280 = arith.addf %277, %279 : vector<16x128xf32>
    %281 = arith.addf %273, %280 : vector<16x128xf32>
    %282 = arith.mulf %215, %198 : vector<16x128xf32>
    %c15_i32_100 = arith.constant 15 : i32
    %283 = tpu.dynamic_rotate %282 by %c15_i32_100 dim 1 : vector<16x128xf32>, i32 -> vector<16x128xf32>
    %284 = arith.mulf %215, %200 : vector<16x128xf32>
    %285 = arith.addf %283, %284 : vector<16x128xf32>
    %286 = arith.mulf %215, %202 : vector<16x128xf32>
    %c1_i32_101 = arith.constant 1 : i32
    %287 = tpu.dynamic_rotate %286 by %c1_i32_101 dim 1 : vector<16x128xf32>, i32 -> vector<16x128xf32>
    %288 = arith.addf %285, %287 : vector<16x128xf32>
    %c1_i32_102 = arith.constant 1 : i32
    %289 = tpu.dynamic_rotate %288 by %c1_i32_102 dim 0 : vector<16x128xf32>, i32 -> vector<16x128xf32>
    %290 = arith.addf %281, %289 : vector<16x128xf32>
    %291 = vector.shape_cast %240 : vector<16x128xf32> to vector<1x16x128xf32>
    %cst_103 = arith.constant dense<0.000000e+00> : vector<1xf32>
    %292 = vector.multi_reduction <add>, %291, %cst_103 [1, 2] : vector<1x16x128xf32> to vector<1xf32>
    %293 = vector.shape_cast %292 : vector<1xf32> to vector<1x1x1xf32>
    %294 = vector.extract %293[0, 0, 0] : f32 from vector<1x1x1xf32>
    %295 = vector.broadcast %294 : f32 to vector<1x1xf32>
    %296 = arith.divf %6, %295 : vector<1x1xf32>
    %297 = vector.broadcast %296 : vector<1x1xf32> to vector<16x128xf32>
    %298 = arith.mulf %240, %297 : vector<16x128xf32>
    %c0_104 = arith.constant 0 : index
    %c0_105 = arith.constant 0 : index
    %299 = vector.load %arg5[%c0_104, %c0_105] : memref<16x128xf32, #tpu.memory_space<vmem>>, vector<16x128xf32>
    tpu.vector_store %arg5[%c0_104, %c0_105], %298 {strides = array<i32>} : memref<16x128xf32, #tpu.memory_space<vmem>>, vector<16x128xf32>,
    %c0_106 = arith.constant 0 : index
    %c0_107 = arith.constant 0 : index
    %c0_108 = arith.constant 0 : index
    %300 = vector.load %arg6[%c0_106, %c0_107, %c0_108] : memref<2x16x128xf32, #tpu.memory_space<vmem>>, vector<1x16x128xf32>
    %301 = vector.shape_cast %300 : vector<1x16x128xf32> to vector<16x128xf32>
    %302 = vector.shape_cast %265 : vector<16x128xf32> to vector<1x16x128xf32>
    tpu.vector_store %arg6[%c0_106, %c0_107, %c0_108], %302 {strides = array<i32>} : memref<2x16x128xf32, #tpu.memory_space<vmem>>, vector<1x16x128xf32>,
    %c1_109 = arith.constant 1 : index
    %c0_110 = arith.constant 0 : index
    %c0_111 = arith.constant 0 : index
    %303 = vector.load %arg6[%c1_109, %c0_110, %c0_111] : memref<2x16x128xf32, #tpu.memory_space<vmem>>, vector<1x16x128xf32>
    %304 = vector.shape_cast %303 : vector<1x16x128xf32> to vector<16x128xf32>
    %305 = vector.shape_cast %290 : vector<16x128xf32> to vector<1x16x128xf32>
    tpu.vector_store %arg6[%c1_109, %c0_110, %c0_111], %305 {strides = array<i32>} : memref<2x16x128xf32, #tpu.memory_space<vmem>>, vector<1x16x128xf32>,
    %c0_112 = arith.constant 0 : index
    %c0_113 = arith.constant 0 : index
    %c0_114 = arith.constant 0 : index
    %306 = vector.load %arg7[%c0_112, %c0_113, %c0_114] : memref<2x16x128xf32, #tpu.memory_space<vmem>>, vector<1x16x128xf32>
    %307 = vector.shape_cast %306 : vector<1x16x128xf32> to vector<16x128xf32>
    %308 = vector.shape_cast %108 : vector<16x128xf32> to vector<1x16x128xf32>
    tpu.vector_store %arg7[%c0_112, %c0_113, %c0_114], %308 {strides = array<i32>} : memref<2x16x128xf32, #tpu.memory_space<vmem>>, vector<1x16x128xf32>,
    %c1_115 = arith.constant 1 : index
    %c0_116 = arith.constant 0 : index
    %c0_117 = arith.constant 0 : index
    %309 = vector.load %arg7[%c1_115, %c0_116, %c0_117] : memref<2x16x128xf32, #tpu.memory_space<vmem>>, vector<1x16x128xf32>
    %310 = vector.shape_cast %309 : vector<1x16x128xf32> to vector<16x128xf32>
    %311 = vector.shape_cast %114 : vector<16x128xf32> to vector<1x16x128xf32>
    tpu.vector_store %arg7[%c1_115, %c0_116, %c0_117], %311 {strides = array<i32>} : memref<2x16x128xf32, #tpu.memory_space<vmem>>, vector<1x16x128xf32>,
    return
  }
  func.func @transform_0(%arg0: i32) -> (i32, i32) {
    %c0_i32 = arith.constant 0 : i32
    %c0_i32_0 = arith.constant 0 : i32
    %c0_i32_1 = arith.constant 0 : i32
    return %c0_i32, %c0_i32_0 : i32, i32
  }
  func.func @transform_1(%arg0: i32) -> (i32, i32, i32) {
    %c0_i32 = arith.constant 0 : i32
    %c0_i32_0 = arith.constant 0 : i32
    %c0_i32_1 = arith.constant 0 : i32
    %c0_i32_2 = arith.constant 0 : i32
    return %c0_i32, %c0_i32_0, %c0_i32_1 : i32, i32, i32
  }
  func.func @transform_2(%arg0: i32) -> (i32, i32, i32) {
    %c0_i32 = arith.constant 0 : i32
    %c0_i32_0 = arith.constant 0 : i32
    %c0_i32_1 = arith.constant 0 : i32
    %c0_i32_2 = arith.constant 0 : i32
    return %c0_i32, %c0_i32_0, %c0_i32_1 : i32, i32, i32
  }
  func.func @transform_3(%arg0: i32) -> (i32, i32) {
    %c0_i32 = arith.constant 0 : i32
    %c0_i32_0 = arith.constant 0 : i32
    %c0_i32_1 = arith.constant 0 : i32
    return %c0_i32, %c0_i32_0 : i32, i32
  }
  func.func @transform_4(%arg0: i32) -> (i32, i32) {
    %c0_i32 = arith.constant 0 : i32
    %c0_i32_0 = arith.constant 0 : i32
    %c0_i32_1 = arith.constant 0 : i32
    return %c0_i32, %c0_i32_0 : i32, i32
  }
  func.func @transform_5(%arg0: i32) -> (i32, i32, i32) {
    %c0_i32 = arith.constant 0 : i32
    %c0_i32_0 = arith.constant 0 : i32
    %c0_i32_1 = arith.constant 0 : i32
    %c0_i32_2 = arith.constant 0 : i32
    return %c0_i32, %c0_i32_0, %c0_i32_1 : i32, i32, i32
  }
  func.func @transform_6(%arg0: i32) -> (i32, i32, i32) {
    %c0_i32 = arith.constant 0 : i32
    %c0_i32_0 = arith.constant 0 : i32
    %c0_i32_1 = arith.constant 0 : i32
    %c0_i32_2 = arith.constant 0 : i32
    return %c0_i32, %c0_i32_0, %c0_i32_1 : i32, i32, i32
  }
}

</mosaic_0001>

<bundles_post_ra>
// kernel: tpu_custom_call.1
= control target key start
LH: loop header
LB: loop body
LE: loop exit
PB: predicated region body
PF: predicated region fallthrough
CT: control target
= control target key end

     0   :  { %12 = vsyncpa [#allocation3], 0  ;;  %s1527_s0 = inlined_call_operand.hbm [shape: f32[16,128], index: 0, kind: input, shape index: {}]   ;;  %s1528_s1 = inlined_call_operand.hbm [shape: f32[2,16,128], index: 1, kind: input, shape index: {}]   ;;  %s1529_s2 = inlined_call_operand.hbm [shape: f32[2,16,128], index: 2, kind: input, shape index: {}]   ;;  %s1530_s3 = inlined_call_operand.hbm [shape: f32[16,128], index: 3, kind: input, shape index: {}]   ;;  %s1531_s4 = inlined_call_operand.hbm [shape: f32[16,128], index: 4, kind: output, shape index: {0}]   ;;  %s1532_s5 = inlined_call_operand.hbm [shape: f32[2,16,128], index: 5, kind: output, shape index: {1}]   ;;  %s1533_s6 = inlined_call_operand.hbm [shape: f32[2,16,128], index: 6, kind: output, shape index: {2}]  }
   0x1   :  { %13 = vsyncpa [#allocation6], 0 }
   0x2   :  { %14 = vsyncpa [#allocation9], 0 }
   0x3   :  { %15 = vsyncpa [#allocation4], 0 }
   0x4   :  { %16 = vsyncpa [#allocation12], 0  ;;  %s34_s23 = sshll.u32 %s1528_s1, 4  ;;  %s999_s24 = smov [#allocation5]   ;;  %s35_s23 = int_to_ptr.hbm [resolvable:$true] %s34_s23 }
   0x5   :  { %s36_s25 = sshll.u32 %s999_s24, 4  ;;  %s21_s28 = sshll.u32 %s1527_s0, 4  ;;  %s37_s25 = int_to_ptr.vmem [resolvable:$true] %s36_s25  ;;  %s22_s28 = int_to_ptr.hbm [resolvable:$true] %s21_s28 }
   0x6   :  { %s1000_s29 = smov 128   ;;  %s1001_s30 = smov 8  }
   0x7   :  { %42 = dma.hbm_to_vmem [thread:$0]  %s35_s23, 512, %s37_s25, [#allocation6], %s1000_s29, %s1000_s29, %s1001_s30  }
   0x8   :  { %s1002_s7 = smov [#allocation2]   ;;  %s47_s1 = sshll.u32 %s1529_s2, 4  ;;  %s48_s1 = int_to_ptr.hbm [resolvable:$true] %s47_s1 }
   0x9   :  { %s23_s8 = sshll.u32 %s1002_s7, 4  ;;  %s60_s12 = sshll.u32 %s1530_s3, 4  ;;  %s24_s8 = int_to_ptr.vmem [resolvable:$true] %s23_s8  ;;  %s61_s12 = int_to_ptr.hbm [resolvable:$true] %s60_s12 }
   0xa   :  { %29 = dma.hbm_to_vmem [thread:$0]  %s22_s28, 256, %s24_s8, [#allocation3], %s1000_s29, %s1000_s29, %s1001_s30  }
   0xb   :  { %s1003_s13 = smov [#allocation7]   ;;  %s1004_s15 = smov [#allocation8]  }
   0xc   :  { %s49_s14 = sshll.u32 %s1003_s13, 4  ;;  %s62_s2 = sshll.u32 %s1004_s15, 4  ;;  %s50_s14 = int_to_ptr.vmem [resolvable:$true] %s49_s14  ;;  %s63_s2 = int_to_ptr.vmem [resolvable:$true] %s62_s2 }
   0xd   :  { %55 = dma.hbm_to_vmem [thread:$0]  %s48_s1, 512, %s50_s14, [#allocation6], %s1000_s29, %s1000_s29, %s1001_s30  }
   0xe   :  { %68 = dma.hbm_to_vmem [thread:$0]  %s61_s12, 256, %s63_s2, [#allocation9], %s1000_s29, %s1000_s29, %s1001_s30  }
   0xf   :  { %989 = dma.done.wait [#allocation3], 256  }
  0x10   :  { %990 = vsyncadd [#allocation3], 4294967040 }
  0x11   :  { %991 = dma.done.wait [#allocation6], 1024  }
  0x12   :  { %992 = vsyncadd [#allocation6], 4294966272 }
  0x13   :  { %993 = dma.done.wait [#allocation9], 256  }
  0x14   :  { %994 = vsyncadd [#allocation9], 4294967040  ;;  %v114_v0 = vlaneseq  ;;  %v85_v2 = vld [vmem:[#allocation8] sm:$0xff]  ;;  %v86_v3 = vld [vmem:[#allocation8 + $0x8] sm:$0xff]  ;;  %s1005_s3 = smov 1   ;;  %s1006_s16 = smov 15  }
  0x15   :  { %v1071_v4 = vld [vmem:[#allocation2] sm:$0xff]  ;;  %v1073_v5 = vld [vmem:[#allocation2 + $0x8] sm:$0xff]  ;;  %s1007_s17 = smov [#allocation11]   ;;  %s723_s21 = sshll.u32 %s1532_s5, 4  ;;  %s724_s21 = int_to_ptr.hbm [resolvable:$true] %s723_s21 }
  0x16   :  { %v1069_v1 = vshrl.u32 %v114_v0, 7  ;;  %v110_v6 = vmul.f32 %v1071_v4, %v85_v2  ;;  %v111_v7 = vmul.f32 %v1073_v5, %v86_v3  ;;  %vm262_vm2 = vcmp.lt.f32.partialorder %v1071_v4, 1e-08  ;;  %s721_s18 = sshll.u32 %s1007_s17, 4  ;;  %s1008_s22 = smov [#allocation13]   ;;  %s722_s18 = int_to_ptr.vmem [resolvable:$true] %s721_s18 }
  0x17   :  { %v1103_v20 = vsel %vm262_vm2, 1.0, %v1071_v4  ;;  %vm263_vm3 = vcmp.lt.f32.partialorder %v1073_v5, 1e-08  ;;  %s734_s23 = sshll.u32 %s1008_s22, 4  ;;  %s736_s26 = sshll.u32 %s1533_s6, 4  ;;  %s735_s23 = int_to_ptr.vmem [resolvable:$true] %s734_s23  ;;  %s737_s26 = int_to_ptr.hbm [resolvable:$true] %s736_s26 }
  0x18   :  { %v112_v8 = vrot.slane %v110_v6, 7  ;;  %vm116_vm0 = vcmp.lt.s32.totalorder %v1069_v1, 1  ;;  %155 = vrot.lane.b32.xlu2 %v110_v6, %s1005_s3  ;;  %v113_v9 = vrot.slane %v111_v7, 7  ;;  %v179_v12 = vrot.slane %v110_v6, 1  ;;  %s1009_s5 = smov [#allocation10]   ;;  %s710_s9 = sshll.u32 %s1531_s4, 4  ;;  %s711_s9 = int_to_ptr.hbm [resolvable:$true] %s710_s9 }
  0x19   :  { %v180_v13 = vrot.slane %v111_v7, 1  ;;  %vm181_vm1 = vcmp.lt.s32.totalorder %v1069_v1, 7  ;;  %775 = vrcp.f32 %v1103_v20  ;;  %v1120_v43 = vsel %vm263_vm3, 1.0, %v1073_v5  ;;  %s708_s6 = sshll.u32 %s1009_s5, 4  ;;  %s709_s6 = int_to_ptr.vmem [resolvable:$true] %s708_s6 }
  0x1a   :  { %v118_v10 = vsel %vm116_vm0, %v113_v9, %v112_v8  ;;  %v117_v11 = vsel %vm116_vm0, %v112_v8, %v113_v9  ;;  %777 = vrcp.f32 %v1120_v43  ;;  %vm279_vm4 = vweird.f32 %v1103_v20 }
  0x1b   :  { %135 = vrot.lane.b32.xlu1 %v118_v10, %s1006_s16  ;;  %119 = vrot.lane.b32.xlu0 %v118_v10, %s1005_s3  ;;  %v182_v14 = vsel %vm181_vm1, %v179_v12, %v180_v13  ;;  %v183_v15 = vsel %vm181_vm1, %v180_v13, %v179_v12  ;;  %v127_v21 = vmul.f32 0.6500037, %v118_v10  ;;  %v131_v24 = vmul.f32 -0.2681628, %v118_v10 }
  0x1c   :  { %v1106_v25 = vmul.f32 -0.6500037, %v182_v14  ;;  %v1108_v26 = vmul.f32 0.2681628, %v182_v14  ;;  %v1110_v27 = vmul.f32 -0.6500037, %v183_v15  ;;  %vm294_vm9 = vweird.f32 %v1120_v43 }
  0x1d   :  { %v1115_v38 = vmul.f32 0.2681628, %v183_v15  ;;  %v128_v42 = vmul.f32 0.6500037, %v117_v11  ;;  %v132_v54 = vmul.f32 -0.2681628, %v117_v11 }
  0x1f   :  { %v1113_v33 = vpop.eup %775 }
  0x20   :  { %157 = vrot.lane.b32.xlu2 %v111_v7, %s1005_s3  ;;  %v275_v47 = vmul.f32 %v1113_v33, %v1103_v20  ;;  %vm280_vm5 = vweird.f32 %v1113_v33 }
  0x21   :  { %vm1143_vm6 = vmor %vm279_vm4, %vm280_vm5 }
  0x22   :  { %v276_v63 = vsub.f32 1.0, %v275_v47 }
  0x23   :  { %137 = vrot.lane.b32.xlu1 %v117_v11, %s1006_s16  ;;  %121 = vrot.lane.b32.xlu0 %v117_v11, %s1005_s3 }
  0x28   :  { %184 = vrot.lane.b32.xlu2 %v182_v14, %s1005_s3 }
  0x2b   :  { %169 = vrot.lane.b32.xlu1 %v111_v7, %s1006_s16  ;;  %167 = vrot.lane.b32.xlu0 %v110_v6, %s1006_s16 }
  0x30   :  { %214 = vrot.lane.b32.xlu2 %v183_v15, %s1006_s16 }
  0x33   :  { %212 = vrot.lane.b32.xlu1 %v182_v14, %s1006_s16  ;;  %186 = vrot.lane.b32.xlu0 %v183_v15, %s1005_s3 }
  0x72   :  { %v156_v16 = vpop.permute.xlu2 %155 }
  0x73   :  { %v159_v39 = vmul.f32 0.6500037, %v156_v16  ;;  %v163_v40 = vmul.f32 -0.2681628, %v156_v16  ;;  %v1125_v16 = vpop.eup %777 }
  0x74   :  { %vm295_vm10 = vweird.f32 %v1125_v16 }
  0x75   :  { %vm1160_vm12 = vmor %vm294_vm9, %vm295_vm10 }
  0x7a   :  { %v158_v17 = vpop.permute.xlu2 %157 }
  0x7b   :  { %v160_v52 = vmul.f32 0.6500037, %v158_v17  ;;  %v164_v55 = vmul.f32 -0.2681628, %v158_v17 }
  0x82   :  { %v185_v32 = vpop.permute.xlu2 %184 }
  0x83   :  { %v188_v41 = vmul.f32 0.26871407, %v185_v32  ;;  %v192_v46 = vmul.f32 0.48518178, %v185_v32  ;;  %v196_v56 = vmul.f32 -0.26871407, %v185_v32 }
  0x84   :  { %v200_v12 = vmul.f32 -0.48518178, %v185_v32 }
  0x8a   :  { %v215_v11 = vpop.permute.xlu2 %214 }
  0x8d   :  { %v136_v18 = vpop.permute.xlu1 %135  ;;  %v120_v19 = vpop.permute.xlu0 %119 }
  0x8e   :  { %v123_v22 = vmul.f32 -0.07921449, %v120_v19  ;;  %v125_v23 = vmul.f32 0.63382, %v120_v19  ;;  %v147_v30 = vmul.f32 0.26871407, %v136_v18 }
  0x8f   :  { %v151_v31 = vmul.f32 0.48518178, %v136_v18  ;;  %v139_v34 = vmul.f32 -0.26871407, %v136_v18  ;;  %v143_v35 = vmul.f32 -0.48518178, %v136_v18  ;;  %v277_v18 = vmul.f32 %v1113_v33, %v276_v63 }
  0x90   :  { %v129_v36 = vadd.f32 %v127_v21, %v123_v22  ;;  %v133_v37 = vadd.f32 %v131_v24, %v125_v23  ;;  %v149_v44 = vadd.f32 %v147_v30, %v123_v22  ;;  %v283_v19 = vand.u32 2147483647, %v1103_v20  ;;  %v105_v63 = vld [vmem:[#allocation7] sm:$0xff] }
  0x91   :  { %v153_v45 = vadd.f32 %v151_v31, %v125_v23  ;;  %v285_v21 = vand.u32 2147483648, %v1103_v20  ;;  %v217_v24 = vmul.f32 0.07921449, %v215_v11 }
  0x92   :  { %v141_v48 = vadd.f32 %v139_v34, %v129_v36  ;;  %v145_v49 = vadd.f32 %v143_v35, %v133_v37  ;;  %v161_v60 = vadd.f32 %v159_v39, %v149_v44  ;;  %vm1147_vm7 = vcmp.eq.f32.partialorder %v283_v19, 8.507059e+37  ;;  %v106_v19 = vld [vmem:[#allocation7 + $0x8] sm:$0xff] }
  0x93   :  { %v165_v61 = vadd.f32 %v163_v40, %v153_v45  ;;  %v290_v40 = vmul.f32 %v1125_v16, %v1120_v43 }
  0x94   :  { %v190_v3 = vadd.f32 %v188_v41, %v141_v48  ;;  %v194_v6 = vadd.f32 %v192_v46, %v145_v49 }
  0x95   :  { %v138_v28 = vpop.permute.xlu1 %137  ;;  %v122_v29 = vpop.permute.xlu0 %121 }
  0x96   :  { %v148_v50 = vmul.f32 0.26871407, %v138_v28  ;;  %v124_v51 = vmul.f32 -0.07921449, %v122_v29  ;;  %v126_v53 = vmul.f32 0.63382, %v122_v29  ;;  %v206_v31 = vadd.f32 %v1106_v25, %v190_v3 }
  0x97   :  { %v152_v57 = vmul.f32 0.48518178, %v138_v28  ;;  %v140_v7 = vmul.f32 -0.26871407, %v138_v28  ;;  %v144_v8 = vmul.f32 -0.48518178, %v138_v28  ;;  %v210_v32 = vadd.f32 %v1108_v26, %v194_v6 }
  0x98   :  { %v150_v0 = vadd.f32 %v148_v50, %v124_v51  ;;  %v130_v9 = vadd.f32 %v128_v42, %v124_v51  ;;  %v134_v10 = vadd.f32 %v132_v54, %v126_v53  ;;  %v221_v28 = vmul.f32 -0.63382, %v215_v11 }
  0x99   :  { %v154_v13 = vadd.f32 %v152_v57, %v126_v53  ;;  %v291_v3 = vsub.f32 1.0, %v290_v40 }
  0x9a   :  { %v162_v22 = vadd.f32 %v160_v52, %v150_v0  ;;  %v142_v29 = vadd.f32 %v140_v7, %v130_v9  ;;  %v146_v30 = vadd.f32 %v144_v8, %v134_v10  ;;  %v278_v0 = vadd.f32 %v1113_v33, %v277_v18  ;;  %v108_v7 = vld [vmem:[#allocation7 + $0x10] sm:$0xff] }
  0x9b   :  { %v166_v34 = vadd.f32 %v164_v55, %v154_v13  ;;  %v246_v8 = vmul.f32 0.9, %v105_v63  ;;  %v254_v11 = vmul.f32 0.9, %v108_v7  ;;  %v286_v13 = vor.u32 1.1754944e-38, %v285_v21 }
  0x9c   :  { %v282_v20 = vsel %vm1143_vm6, %v1113_v33, %v278_v0  ;;  %v247_v21 = vmul.f32 0.9, %v106_v19  ;;  %v300_v33 = vand.u32 2147483648, %v1120_v43 }
  0x9d   :  { %v170_v58 = vpop.permute.xlu1 %169  ;;  %v168_v59 = vpop.permute.xlu0 %167 }
  0x9e   :  { %v171_v62 = vmul.f32 -0.6500037, %v168_v59  ;;  %v175_v2 = vmul.f32 0.2681628, %v168_v59  ;;  %v172_v14 = vmul.f32 -0.6500037, %v170_v58 }
  0x9f   :  { %v176_v23 = vmul.f32 0.2681628, %v170_v58 }
  0xa0   :  { %v173_v15 = vadd.f32 %v171_v62, %v161_v60  ;;  %v177_v17 = vadd.f32 %v175_v2, %v165_v61  ;;  %v174_v35 = vadd.f32 %v172_v14, %v162_v22 }
  0xa1   :  { %v178_v46 = vadd.f32 %v176_v23, %v166_v34 }
  0xa2   :  { %v198_v37 = vadd.f32 %v196_v56, %v173_v15  ;;  %v202_v41 = vadd.f32 %v200_v12, %v177_v17 }
  0xa5   :  { %v213_v36 = vpop.permute.xlu1 %212  ;;  %v187_v39 = vpop.permute.xlu0 %186 }
  0xa6   :  { %v216_v42 = vmul.f32 0.07921449, %v213_v36  ;;  %v220_v44 = vmul.f32 -0.63382, %v213_v36  ;;  %v189_v45 = vmul.f32 0.26871407, %v187_v39 }
  0xa7   :  { %v193_v47 = vmul.f32 0.48518178, %v187_v39  ;;  %v197_v48 = vmul.f32 -0.26871407, %v187_v39  ;;  %v201_v49 = vmul.f32 -0.48518178, %v187_v39 }
  0xa8   :  { %v218_v50 = vadd.f32 %v216_v42, %v206_v31  ;;  %v222_v25 = vadd.f32 %v220_v44, %v210_v32  ;;  %v224_v51 = vadd.f32 %v216_v42, %v198_v37  ;;  %v226_v26 = vadd.f32 %v220_v44, %v202_v41  ;;  %v100_v37 = vld [vmem:[#allocation5] sm:$0xff]  ;;  %v103_v39 = vld [vmem:[#allocation5 + $0x10] sm:$0xff] }
  0xa9   :  { %v191_v52 = vadd.f32 %v189_v45, %v142_v29  ;;  %v195_v53 = vadd.f32 %v193_v47, %v146_v30  ;;  %v199_v54 = vadd.f32 %v197_v48, %v174_v35  ;;  %v203_v55 = vadd.f32 %v201_v49, %v178_v46  ;;  %v109_v30 = vld [vmem:[#allocation7 + $0x18] sm:$0xff] }
  0xaa   :  { %v228_v56 = vand.u32 2147483647, %v218_v50  ;;  %v230_v57 = vand.u32 2147483647, %v224_v51  ;;  %v234_v58 = vand.u32 2147483647, %v222_v25 }
  0xab   :  { %v236_v59 = vand.u32 2147483647, %v226_v26  ;;  %v207_v60 = vadd.f32 %v1110_v27, %v191_v52  ;;  %v211_v61 = vadd.f32 %v1115_v38, %v195_v53  ;;  %v225_v62 = vadd.f32 %v217_v24, %v199_v54  ;;  %v104_v53 = vld [vmem:[#allocation5 + $0x18] sm:$0xff] }
  0xac   :  { %v232_v2 = vadd.f32 %v230_v57, %v228_v56  ;;  %v227_v6 = vadd.f32 %v221_v28, %v203_v55  ;;  %v255_v34 = vmul.f32 0.9, %v109_v30  ;;  %v298_v41 = vand.u32 2147483647, %v1120_v43  ;;  %v101_v43 = vld [vmem:[#allocation5 + $0x8] sm:$0xff] }
  0xad   :  { %v238_v27 = vadd.f32 %v236_v59, %v234_v58  ;;  %v219_v10 = vadd.f32 %v217_v24, %v207_v60  ;;  %v223_v38 = vadd.f32 %v221_v28, %v211_v61  ;;  %v231_v14 = vand.u32 2147483647, %v225_v62 }
  0xae   :  { %v237_v18 = vand.u32 2147483647, %v227_v6  ;;  %v292_v24 = vmul.f32 %v1125_v16, %v291_v3  ;;  %vm299_vm13 = vcmp.eq.f32.partialorder %v298_v41, 8.507059e+37  ;;  %v301_v55 = vor.u32 1.1754944e-38, %v300_v33 }
  0xaf   :  { %vm240_vm8 = vcmp.gt.f32.partialorder %v232_v2, %v238_v27  ;;  %v229_v15 = vand.u32 2147483647, %v219_v10  ;;  %v235_v17 = vand.u32 2147483647, %v223_v38 }
  0xb0   :  { %v242_v22 = vsel %vm240_vm8, %v218_v50, %v222_v25  ;;  %v244_v23 = vsel %vm240_vm8, %v222_v25, %v224_v51  ;;  %v293_v40 = vadd.f32 %v1125_v16, %v292_v24  ;;  %v287_v50 = vsel %vm1147_vm7, %v286_v13, %v282_v20 }
  0xb1   :  { %v248_v28 = vsub.f32 %v242_v22, %v105_v63  ;;  %v256_v29 = vsub.f32 %v244_v23, %v108_v7  ;;  %v233_v31 = vadd.f32 %v231_v14, %v229_v15  ;;  %v239_v32 = vadd.f32 %v237_v18, %v235_v17 }
  0xb2   :  { %v297_v54 = vsel %vm1160_vm12, %v1125_v16, %v293_v40 }
  0xb3   :  { %v250_v35 = vmul.f32 0.1, %v248_v28  ;;  %v258_v36 = vmul.f32 0.1, %v256_v29  ;;  %vm241_vm11 = vcmp.gt.f32.partialorder %v233_v31, %v239_v32  ;;  %v302_v2 = vsel %vm299_vm13, %v301_v55, %v297_v54 }
  0xb4   :  { %v243_v42 = vsel %vm241_vm11, %v219_v10, %v223_v38  ;;  %v245_v44 = vsel %vm241_vm11, %v223_v38, %v225_v62 }
  0xb5   :  { %v252_v45 = vadd.f32 %v250_v35, %v246_v8  ;;  %v260_v46 = vadd.f32 %v258_v36, %v254_v11  ;;  %v249_v48 = vsub.f32 %v243_v42, %v106_v19  ;;  %v257_v49 = vsub.f32 %v245_v44, %v109_v30 }
  0xb7   :  { %v264_v25 = vadd.f32 %v252_v45, %v100_v37  ;;  %v268_v51 = vadd.f32 %v260_v46, %v103_v39  ;;  %699 = vst [vmem:[#allocation13] sm:$0xff] %v252_v45  ;;  %v251_v26 = vmul.f32 0.1, %v249_v48  ;;  %v259_v52 = vmul.f32 0.1, %v257_v49 }
  0xb8   :  { %702 = vst [vmem:[#allocation13 + $0x10] sm:$0xff] %v260_v46 }
  0xb9   :  { %v1171_v56 = vsel %vm262_vm2, 0.0, %v264_v25  ;;  %v1175_v57 = vsel %vm262_vm2, 0.0, %v268_v51  ;;  %v253_v58 = vadd.f32 %v251_v26, %v247_v21  ;;  %v261_v59 = vadd.f32 %v259_v52, %v255_v34 }
  0xba   :  { %v304_v60 = vmul.f32 %v287_v50, %v1171_v56  ;;  %v306_v61 = vmul.f32 %v287_v50, %v1175_v57 }
  0xbb   :  { %v265_v62 = vadd.f32 %v253_v58, %v101_v43  ;;  %v269_v63 = vadd.f32 %v261_v59, %v104_v53  ;;  %700 = vst [vmem:[#allocation13 + $0x8] sm:$0xff] %v253_v58 }
  0xbc   :  { %v308_v16 = vmul.f32 0.70710677, %v304_v60  ;;  %v310_v0 = vmul.f32 0.70710677, %v306_v61  ;;  %v318_v3 = vmul.f32 -0.70710677, %v304_v60 }
  0xbd   :  { %v1181_v7 = vsel %vm263_vm3, 0.0, %v265_v62  ;;  %v1185_v8 = vsel %vm263_vm3, 0.0, %v269_v63  ;;  %703 = vst [vmem:[#allocation13 + $0x18] sm:$0xff] %v261_v59  ;;  %v316_v38 = vmul.f32 0.1, %v306_v61  ;;  %v326_v22 = vmul.f32 -1.0, %v304_v60 }
  0xbe   :  { %v312_v6 = vadd.f32 %v310_v0, %v308_v16  ;;  %v320_v9 = vadd.f32 %v318_v3, %v310_v0  ;;  %v305_v27 = vmul.f32 %v302_v2, %v1181_v7  ;;  %v307_v11 = vmul.f32 %v302_v2, %v1185_v8 }
  0xbf   :  { %v330_v15 = vmul.f32 -0.70710677, %v306_v61  ;;  %v324_v20 = vmul.f32 0.1, %v304_v60  ;;  %v336_v32 = vmul.f32 -1.0, %v306_v61 }
  0xc0   :  { %v314_v10 = vmul.f32 0.1, %v312_v6  ;;  %v309_v12 = vmul.f32 0.70710677, %v305_v27  ;;  %v319_v13 = vmul.f32 -0.70710677, %v305_v27 }
  0xc1   :  { %v322_v14 = vmul.f32 0.1, %v320_v9  ;;  %v311_v18 = vmul.f32 0.70710677, %v307_v11  ;;  %v332_v29 = vadd.f32 %v330_v15, %v308_v16  ;;  %v317_v31 = vmul.f32 0.1, %v307_v11 }
  0xc2   :  { %v344_v17 = vmax.f32 %v314_v10, %v316_v38  ;;  %v328_v21 = vmul.f32 0.1, %v326_v22  ;;  %v340_v33 = vadd.f32 %v330_v15, %v318_v3  ;;  %v325_v40 = vmul.f32 0.1, %v305_v27 }
  0xc3   :  { %v313_v24 = vadd.f32 %v311_v18, %v309_v12  ;;  %v321_v28 = vadd.f32 %v319_v13, %v311_v18  ;;  %v334_v37 = vmul.f32 0.1, %v332_v29  ;;  %v327_v42 = vmul.f32 -1.0, %v305_v27 }
  0xc4   :  { %v346_v23 = vmax.f32 %v344_v17, %v322_v14  ;;  %v331_v44 = vmul.f32 -0.70710677, %v307_v11  ;;  %v338_v45 = vmul.f32 0.1, %v336_v32  ;;  %v342_v48 = vmul.f32 0.1, %v340_v33 }
  0xc5   :  { %v315_v30 = vmul.f32 0.1, %v313_v24  ;;  %v323_v35 = vmul.f32 0.1, %v321_v28  ;;  %v1189_v25 = vmul.f32 0.1, %v327_v42 }
  0xc6   :  { %v348_v19 = vmax.f32 %v346_v23, %v324_v20  ;;  %v333_v51 = vadd.f32 %v331_v44, %v309_v12  ;;  %v337_v52 = vmul.f32 -1.0, %v307_v11  ;;  %v341_v60 = vadd.f32 %v331_v44, %v319_v13 }
  0xc7   :  { %v345_v36 = vmax.f32 %v315_v30, %v317_v31 }
  0xc8   :  { %v350_v34 = vmax.f32 %v348_v19, 0.0  ;;  %v1192_v59 = vmul.f32 0.1, %v333_v51  ;;  %v1194_v0 = vmul.f32 0.1, %v337_v52 }
  0xc9   :  { %v347_v41 = vmax.f32 %v345_v36, %v323_v35  ;;  %v343_v9 = vmul.f32 0.1, %v341_v60 }
  0xca   :  { %v352_v39 = vmax.f32 %v350_v34, %v328_v21 }
  0xcb   :  { %v349_v47 = vmax.f32 %v347_v41, %v325_v40 }
  0xcc   :  { %v354_v46 = vmax.f32 %v352_v39, %v334_v37 }
  0xcd   :  { %v351_v50 = vmax.f32 %v349_v47, 0.0 }
  0xce   :  { %v356_v49 = vmax.f32 %v354_v46, %v338_v45 }
  0xcf   :  { %v353_v43 = vmax.f32 %v351_v50, %v1189_v25 }
  0xd0   :  { %v358_v26 = vmax.f32 %v356_v49, %v342_v48 }
  0xd1   :  { %v355_v2 = vmax.f32 %v353_v43, %v1192_v59 }
  0xd2   :  { %v360_v53 = vsub.f32 %v314_v10, %v358_v26  ;;  %v366_v54 = vsub.f32 %v316_v38, %v358_v26  ;;  %v372_v55 = vsub.f32 %v322_v14, %v358_v26  ;;  %v378_v58 = vsub.f32 %v324_v20, %v358_v26 }
  0xd3   :  { %v384_v16 = vsub.f32 0.0, %v358_v26  ;;  %v390_v3 = vsub.f32 %v328_v21, %v358_v26  ;;  %v357_v27 = vmax.f32 %v355_v2, %v1194_v0  ;;  %v396_v38 = vsub.f32 %v334_v37, %v358_v26 }
  0xd4   :  { %v362_v61 = vmul.f32 1.442695, %v360_v53  ;;  %v368_v62 = vmul.f32 1.442695, %v366_v54  ;;  %v374_v63 = vmul.f32 1.442695, %v372_v55  ;;  %v402_v13 = vsub.f32 %v338_v45, %v358_v26 }
  0xd5   :  { %v380_v6 = vmul.f32 1.442695, %v378_v58  ;;  %v386_v10 = vmul.f32 1.442695, %v384_v16  ;;  %v359_v11 = vmax.f32 %v357_v27, %v343_v9  ;;  %v392_v12 = vmul.f32 1.442695, %v390_v3 }
  0xd6   :  { %779 = vpow2.f32 %v362_v61  ;;  %v408_v20 = vsub.f32 %v342_v48, %v358_v26  ;;  %v398_v24 = vmul.f32 1.442695, %v396_v38 }
  0xd7   :  { %781 = vpow2.f32 %v368_v62  ;;  %v361_v14 = vsub.f32 %v315_v30, %v359_v11  ;;  %v367_v15 = vsub.f32 %v317_v31, %v359_v11  ;;  %v373_v17 = vsub.f32 %v323_v35, %v359_v11 }
  0xd8   :  { %783 = vpow2.f32 %v374_v63  ;;  %v379_v22 = vsub.f32 %v325_v40, %v359_v11  ;;  %v385_v21 = vsub.f32 0.0, %v359_v11  ;;  %v404_v30 = vmul.f32 1.442695, %v402_v13 }
  0xd9   :  { %785 = vpow2.f32 %v380_v6  ;;  %v364_v28 = vmul.f32 1.442695, %v361_v14  ;;  %v370_v29 = vmul.f32 1.442695, %v367_v15  ;;  %v376_v32 = vmul.f32 1.442695, %v373_v17 }
  0xda   :  { %787 = vpow2.f32 %v386_v10  ;;  %v382_v35 = vmul.f32 1.442695, %v379_v22  ;;  %v391_v36 = vsub.f32 %v1189_v25, %v359_v11  ;;  %v410_v37 = vmul.f32 1.442695, %v408_v20 }
  0xdb   :  { %789 = vpow2.f32 %v392_v12  ;;  %v388_v40 = vmul.f32 1.442695, %v385_v21  ;;  %v397_v41 = vsub.f32 %v1192_v59, %v359_v11  ;;  %v403_v47 = vsub.f32 %v1194_v0, %v359_v11 }
  0xdc   :  { %v1198_v18 = vpop.eup %779  ;;  %791 = vpow2.f32 %v364_v28  ;;  %v394_v46 = vmul.f32 1.442695, %v391_v36  ;;  %v409_v49 = vsub.f32 %v343_v9, %v359_v11 }
  0xdd   :  { %v1200_v23 = vpop.eup %781  ;;  %793 = vpow2.f32 %v370_v29  ;;  %v400_v51 = vmul.f32 1.442695, %v397_v41  ;;  %v406_v54 = vmul.f32 1.442695, %v403_v47 }
  0xde   :  { %v414_v19 = vadd.f32 %v1200_v23, %v1198_v18  ;;  %v1204_v34 = vpop.eup %783  ;;  %795 = vpow2.f32 %v398_v24  ;;  %v412_v58 = vmul.f32 1.442695, %v409_v49 }
  0xdf   :  { %v1208_v33 = vpop.eup %785  ;;  %797 = vpow2.f32 %v376_v32 }
  0xe0   :  { %v416_v31 = vadd.f32 %v1204_v34, %v414_v19  ;;  %v1212_v42 = vpop.eup %787  ;;  %799 = vpow2.f32 %v404_v30 }
  0xe1   :  { %v1214_v44 = vpop.eup %789  ;;  %801 = vpow2.f32 %v382_v35 }
  0xe2   :  { %v418_v39 = vadd.f32 %v1208_v33, %v416_v31  ;;  %v1218_v48 = vpop.eup %791  ;;  %803 = vpow2.f32 %v410_v37 }
  0xe3   :  { %v1220_v50 = vpop.eup %793  ;;  %805 = vpow2.f32 %v388_v40 }
  0xe4   :  { %v420_v45 = vadd.f32 %v1212_v42, %v418_v39  ;;  %v1223_v26 = vpop.eup %795  ;;  %v415_v52 = vadd.f32 %v1220_v50, %v1218_v48  ;;  %807 = vpow2.f32 %v394_v46 }
  0xe5   :  { %v1227_v43 = vpop.eup %797  ;;  %809 = vpow2.f32 %v400_v51 }
  0xe6   :  { %v422_v25 = vadd.f32 %v1214_v44, %v420_v45  ;;  %v1230_v55 = vpop.eup %799  ;;  %v417_v59 = vadd.f32 %v1227_v43, %v415_v52  ;;  %811 = vpow2.f32 %v406_v54 }
  0xe7   :  { %v1233_v60 = vpop.eup %801  ;;  %813 = vpow2.f32 %v412_v58 }
  0xe8   :  { %v424_v53 = vadd.f32 %v1223_v26, %v422_v25  ;;  %v1236_v62 = vpop.eup %803  ;;  %v419_v63 = vadd.f32 %v1233_v60, %v417_v59 }
  0xe9   :  { %v1239_v16 = vpop.eup %805 }
  0xea   :  { %v426_v61 = vadd.f32 %v1230_v55, %v424_v53  ;;  %v421_v2 = vadd.f32 %v1239_v16, %v419_v63  ;;  %v1243_v3 = vpop.eup %807 }
  0xeb   :  { %v1246_v9 = vpop.eup %809 }
  0xec   :  { %v428_v0 = vadd.f32 %v1236_v62, %v426_v61  ;;  %v423_v6 = vadd.f32 %v1243_v3, %v421_v2  ;;  %v1249_v10 = vpop.eup %811 }
  0xed   :  { %v1251_v38 = vpop.eup %813 }
  0xee   :  { %815 = vrcp.f32 %v428_v0  ;;  %v425_v27 = vadd.f32 %v1246_v9, %v423_v6  ;;  %v441_v17 = vand.u32 2147483648, %v428_v0  ;;  %v439_v22 = vand.u32 2147483647, %v428_v0 }
  0xef   :  { %vm435_vm15 = vweird.f32 %v428_v0 }
  0xf0   :  { %v427_v11 = vadd.f32 %v1249_v10, %v425_v27  ;;  %v442_v28 = vor.u32 1.1754944e-38, %v441_v17  ;;  %vm440_vm3 = vcmp.eq.f32.partialorder %v439_v22, 8.507059e+37 }
  0xf2   :  { %v429_v14 = vadd.f32 %v1251_v38, %v427_v11 }
  0xf4   :  { %v816_v12 = vpop.eup %815  ;;  %817 = vrcp.f32 %v429_v14  ;;  %v454_v31 = vand.u32 2147483647, %v429_v14  ;;  %v456_v37 = vand.u32 2147483648, %v429_v14  ;;  %vm450_vm5 = vweird.f32 %v429_v14 }
  0xf5   :  { %v431_v13 = vmul.f32 %v816_v12, %v428_v0  ;;  %vm436_vm14 = vweird.f32 %v816_v12 }
  0xf6   :  { %vm437_vm2 = vmor %vm435_vm15, %vm436_vm14  ;;  %vm1266_vm6 = vcmp.eq.f32.partialorder %v454_v31, 8.507059e+37 }
  0xf7   :  { %v432_v15 = vsub.f32 1.0, %v431_v13 }
  0xf9   :  { %v433_v20 = vmul.f32 %v816_v12, %v432_v15 }
  0xfa   :  { %v818_v29 = vpop.eup %817 }
  0xfb   :  { %v434_v24 = vadd.f32 %v816_v12, %v433_v20  ;;  %v446_v21 = vmul.f32 %v818_v29, %v429_v14  ;;  %vm451_vm4 = vweird.f32 %v818_v29 }
  0xfc   :  { %vm452_vm7 = vmor %vm450_vm5, %vm451_vm4 }
  0xfd   :  { %v438_v19 = vsel %vm437_vm2, %v816_v12, %v434_v24  ;;  %v447_v36 = vsub.f32 1.0, %v446_v21 }
  0xfe   :  { %v443_v32 = vsel %vm440_vm3, %v442_v28, %v438_v19 }
  0xff   :  { %v1256_v30 = vmul.f32 %v443_v32, %v1071_v4  ;;  %v464_v35 = vmul.f32 %v443_v32, %v1175_v57  ;;  %v1260_v39 = vmul.f32 %v443_v32, %v1171_v56  ;;  %v448_v45 = vmul.f32 %v818_v29, %v447_v36 }
 0x100   :  { %v457_v56 = vor.u32 1.1754944e-38, %v456_v37 }
 0x101   :  { %v476_v40 = vmul.f32 %v1204_v34, %v1256_v30  ;;  %v466_v41 = vmul.f32 %v1198_v18, %v1256_v30  ;;  %v449_v57 = vadd.f32 %v818_v29, %v448_v45  ;;  %v1273_v47 = vmul.f32 %v1204_v34, %v464_v35 }
 0x102   :  { %v1276_v49 = vmul.f32 %v1223_v26, %v464_v35  ;;  %v1280_v25 = vmul.f32 %v1236_v62, %v1260_v39  ;;  %v1284_v51 = vmul.f32 %v1200_v23, %v1256_v30  ;;  %v1287_v52 = vmul.f32 %v1236_v62, %v464_v35 }
 0x103   :  { %478 = vrot.lane.b32.xlu2 %v476_v40, %s1005_s3  ;;  %468 = vrot.lane.b32.xlu0 %v466_v41, %s1006_s16  ;;  %v1291_v53 = vmul.f32 %v1200_v23, %v1260_v39  ;;  %v453_v54 = vsel %vm452_vm7, %v818_v29, %v449_v57  ;;  %v1294_v58 = vmul.f32 %v1214_v44, %v464_v35 }
 0x104   :  { %v1298_v59 = vmul.f32 %v1230_v55, %v1256_v30  ;;  %v1302_v61 = vmul.f32 %v1212_v42, %v1256_v30  ;;  %v458_v63 = vsel %vm1266_vm6, %v457_v56, %v453_v54  ;;  %v1308_v0 = vmul.f32 %v1212_v42, %v1260_v39 }
 0x105   :  { %v1311_v2 = vmul.f32 %v1198_v18, %v464_v35  ;;  %v1315_v6 = vmul.f32 %v1230_v55, %v1260_v39  ;;  %v461_v27 = vmul.f32 %v458_v63, %v1073_v5  ;;  %v465_v11 = vmul.f32 %v458_v63, %v1185_v8 }
 0x106   :  { %v1320_v12 = vmul.f32 %v1208_v33, %v464_v35  ;;  %v1323_v13 = vmul.f32 %v1230_v55, %v464_v35  ;;  %v1326_v14 = vmul.f32 %v1200_v23, %v464_v35  ;;  %v1329_v15 = vmul.f32 %v1212_v42, %v464_v35 }
 0x107   :  { %v463_v17 = vmul.f32 %v458_v63, %v1181_v7  ;;  %v467_v20 = vmul.f32 %v1218_v48, %v461_v27  ;;  %v509_v22 = vmul.f32 %v1246_v9, %v461_v27  ;;  %v477_v8 = vmul.f32 %v1227_v43, %v461_v27 }
 0x108   :  { %v599_v55 = vmul.f32 %v1218_v48, %v465_v11  ;;  %v1340_v23 = vmul.f32 %v1249_v10, %v461_v27  ;;  %v641_v42 = vmul.f32 %v1246_v9, %v465_v11  ;;  %v621_v7 = vmul.f32 %v1233_v60, %v465_v11 }
 0x109   :  { %470 = vrot.lane.b32.xlu1 %v467_v20, %s1006_s16  ;;  %v1345_v24 = vmul.f32 %v1220_v50, %v461_v27  ;;  %v651_v28 = vmul.f32 %v1251_v38, %v465_v11  ;;  %v1349_v29 = vmul.f32 %v1243_v3, %v465_v11  ;;  %v1352_v19 = vmul.f32 %v1220_v50, %v463_v17 }
 0x10a   :  { %v1355_v32 = vmul.f32 %v1239_v16, %v461_v27  ;;  %v1358_v21 = vmul.f32 %v1239_v16, %v463_v17  ;;  %v1361_v31 = vmul.f32 %v1220_v50, %v465_v11  ;;  %v1364_v35 = vmul.f32 %v1227_v43, %v465_v11 }
 0x10b   :  { %512 = vrot.lane.b32.xlu2 %v509_v22, %s1006_s16  ;;  %480 = vrot.lane.b32.xlu0 %v477_v8, %s1005_s3  ;;  %v1367_v36 = vmul.f32 %v1249_v10, %v465_v11  ;;  %v1370_v37 = vmul.f32 %v1251_v38, %v463_v17  ;;  %v1373_v40 = vmul.f32 %v1249_v10, %v463_v17 }
 0x10c   :  { %v1376_v41 = vmul.f32 %v1243_v3, %v463_v17  ;;  %v1379_v45 = vmul.f32 %v1239_v16, %v465_v11  ;;  %v508_v50 = vmul.f32 %v1223_v26, %v1256_v30  ;;  %v518_v46 = vmul.f32 %v1236_v62, %v1256_v30 }
 0x10d   :  { %v488_v57 = vmul.f32 %v1208_v33, %v1256_v30  ;;  %v489_v10 = vmul.f32 %v1233_v60, %v461_v27  ;;  %v499_v16 = vmul.f32 %v1243_v3, %v461_v27  ;;  %v519_v56 = vmul.f32 %v1251_v38, %v461_v27 }
 0x10e   :  { %v498_v62 = vmul.f32 %v1214_v44, %v1256_v30  ;;  %v532_v54 = vmul.f32 %v1198_v18, %v1260_v39  ;;  %v533_v3 = vmul.f32 %v1218_v48, %v463_v17  ;;  %v542_v38 = vmul.f32 %v1204_v34, %v1260_v39 }
 0x10f   :  { %v543_v63 = vmul.f32 %v1227_v43, %v463_v17  ;;  %v554_v18 = vmul.f32 %v1208_v33, %v1260_v39  ;;  %v89_v30 = vadd.f32 %v1073_v5, %v1071_v4  ;;  %v555_v48 = vmul.f32 %v1233_v60, %v463_v17 }
 0x110   :  { %v564_v34 = vmul.f32 %v1214_v44, %v1260_v39  ;;  %v574_v43 = vmul.f32 %v1223_v26, %v1260_v39  ;;  %v575_v5 = vmul.f32 %v1246_v9, %v463_v17 }
 0x111   :  { %510 = vrot.lane.b32.xlu1 %v508_v50, %s1006_s16 }
 0x113   :  { %520 = vrot.lane.b32.xlu2 %v518_v46, %s1005_s3  ;;  %490 = vrot.lane.b32.xlu0 %v488_v57, %s1006_s16 }
 0x119   :  { %492 = vrot.lane.b32.xlu1 %v489_v10, %s1006_s16 }
 0x11b   :  { %502 = vrot.lane.b32.xlu2 %v499_v16, %s1005_s3  ;;  %522 = vrot.lane.b32.xlu0 %v519_v56, %s1005_s3 }
 0x121   :  { %500 = vrot.lane.b32.xlu1 %v498_v62, %s1005_s3 }
 0x123   :  { %534 = vrot.lane.b32.xlu2 %v532_v54, %s1006_s16 }
 0x12b   :  { %536 = vrot.lane.b32.xlu2 %v533_v3, %s1006_s16 }
 0x133   :  { %544 = vrot.lane.b32.xlu2 %v542_v38, %s1005_s3 }
 0x13b   :  { %546 = vrot.lane.b32.xlu2 %v543_v63, %s1005_s3 }
 0x143   :  { %556 = vrot.lane.b32.xlu2 %v554_v18, %s1006_s16 }
 0x145   :  { %90 = vadd.xlane.f32.xlu0 %v89_v30 }
 0x14b   :  { %558 = vrot.lane.b32.xlu2 %v555_v48, %s1006_s16 }
 0x153   :  { %602 = vrot.lane.b32.xlu2 %v599_v55, %s1006_s16 }
 0x159   :  { %566 = vrot.lane.b32.xlu0 %v564_v34, %s1005_s3 }
 0x15b   :  { %576 = vrot.lane.b32.xlu2 %v574_v43, %s1006_s16 }
 0x15d   :  { %v479_v4 = vpop.permute.xlu2 %478 }
 0x161   :  { %578 = vrot.lane.b32.xlu0 %v575_v5, %s1006_s16 }
 0x163   :  { %610 = vrot.lane.b32.xlu2 %v1273_v47, %s1005_s3 }
 0x165   :  { %v513_v33 = vpop.permute.xlu2 %512 }
 0x169   :  { %642 = vrot.lane.b32.xlu0 %v1276_v49, %s1006_s16 }
 0x16b   :  { %644 = vrot.lane.b32.xlu2 %v641_v42, %s1006_s16 }
 0x16d   :  { %v521_v44 = vpop.permute.xlu2 %520 }
 0x171   :  { %624 = vrot.lane.b32.xlu0 %v621_v7, %s1006_s16 }
 0x173   :  { %586 = vrot.lane.b32.xlu2 %v1280_v25, %s1005_s3 }
 0x175   :  { %v469_v26 = vpop.permute.xlu0 %468  ;;  %v503_v60 = vpop.permute.xlu2 %502 }
 0x176   :  { %v474_v9 = vadd.f32 %v1284_v51, %v469_v26 }
 0x178   :  { %v482_v49 = vadd.f32 %v479_v4, %v474_v9 }
 0x179   :  { %652 = vrot.lane.b32.xlu0 %v1287_v52, %s1005_s3 }
 0x17a   :  { %v484_v22 = vrot.slane %v482_v49, 1 }
 0x17b   :  { %654 = vrot.lane.b32.xlu2 %v651_v28, %s1005_s3  ;;  %v471_v39 = vpop.permute.xlu1 %470 }
 0x17c   :  { %v475_v27 = vadd.f32 %v1345_v24, %v471_v39  ;;  %v517_v24 = vadd.f32 %v1340_v23, %v513_v33 }
 0x17d   :  { %v535_v47 = vpop.permute.xlu2 %534  ;;  %v481_v17 = vpop.permute.xlu0 %480 }
 0x17e   :  { %v540_v11 = vadd.f32 %v1291_v53, %v535_v47  ;;  %v483_v20 = vadd.f32 %v481_v17, %v475_v27 }
 0x180   :  { %v485_v25 = vrot.slane %v483_v20, 1 }
 0x181   :  { %632 = vrot.lane.b32.xlu0 %v1294_v58, %s1005_s3 }
 0x182   :  { %v487_v51 = vsel %vm181_vm1, %v485_v25, %v484_v22  ;;  %v486_v52 = vsel %vm181_vm1, %v484_v22, %v485_v25 }
 0x183   :  { %634 = vrot.lane.b32.xlu2 %v1349_v29, %s1005_s3  ;;  %v511_v8 = vpop.permute.xlu1 %510 }
 0x184   :  { %v516_v7 = vadd.f32 %v1298_v59, %v511_v8 }
 0x185   :  { %v537_v55 = vpop.permute.xlu2 %536  ;;  %v491_v42 = vpop.permute.xlu0 %490 }
 0x186   :  { %v541_v53 = vadd.f32 %v1352_v19, %v537_v55  ;;  %v524_v28 = vadd.f32 %v521_v44, %v516_v7  ;;  %v496_v23 = vadd.f32 %v1302_v61, %v491_v42 }
 0x188   :  { %v526_v56 = vrot.slane %v524_v28, 7 }
 0x18b   :  { %v493_v58 = vpop.permute.xlu1 %492 }
 0x18c   :  { %v497_v29 = vadd.f32 %v1355_v32, %v493_v58 }
 0x18d   :  { %v545_v50 = vpop.permute.xlu2 %544  ;;  %v523_v57 = vpop.permute.xlu0 %522 }
 0x18e   :  { %v548_v46 = vadd.f32 %v545_v50, %v540_v11  ;;  %v525_v10 = vadd.f32 %v523_v57, %v517_v24  ;;  %v505_v16 = vadd.f32 %v503_v60, %v497_v29 }
 0x190   :  { %v527_v62 = vrot.slane %v525_v10, 7  ;;  %v507_v54 = vadd.f32 %v505_v16, %v487_v51  ;;  %v550_v30 = vrot.slane %v548_v46, 1 }
 0x192   :  { %v528_v19 = vsel %vm116_vm0, %v526_v56, %v527_v62  ;;  %v529_v59 = vsel %vm116_vm0, %v527_v62, %v526_v56 }
 0x193   :  { %v1456_v3 = vadd.f32 %v528_v19, %v507_v54  ;;  %v501_v38 = vpop.permute.xlu1 %500 }
 0x194   :  { %v504_v32 = vadd.f32 %v501_v38, %v496_v23 }
 0x195   :  { %v547_v63 = vpop.permute.xlu2 %546 }
 0x196   :  { %v549_v18 = vadd.f32 %v547_v63, %v541_v53  ;;  %v506_v48 = vadd.f32 %v504_v32, %v486_v52 }
 0x198   :  { %v551_v34 = vrot.slane %v549_v18, 1  ;;  %v1458_v43 = vadd.f32 %v529_v59, %v506_v48 }
 0x19a   :  { %v552_v4 = vsel %vm181_vm1, %v550_v30, %v551_v34  ;;  %v1464_v5 = vsel %vm181_vm1, %v551_v34, %v550_v30  ;;  %v664_v61 = vadd.f32 %v1456_v3, %v1458_v43 }
 0x19c   :  { %665 = vadd.xlane.f32.xlu1 %v664_v61 }
 0x19d   :  { %v557_v33 = vpop.permute.xlu2 %556 }
 0x19e   :  { %v562_v44 = vadd.f32 %v1308_v0, %v557_v33 }
 0x1a5   :  { %v559_v26 = vpop.permute.xlu2 %558 }
 0x1a6   :  { %v1470_v60 = vadd.f32 %v1358_v21, %v559_v26 }
 0x1ad   :  { %v603_v9 = vpop.permute.xlu2 %602 }
 0x1ae   :  { %v607_v54 = vadd.f32 %v1361_v31, %v603_v9 }
 0x1b5   :  { %600 = vrot.lane.b32.xlu1 %v1311_v2, %s1006_s16  ;;  %v577_v39 = vpop.permute.xlu2 %576 }
 0x1b8   :  { %v91_v47 = vpop.xlane.xlu0 %90 }
 0x1bd   :  { %612 = vrot.lane.b32.xlu1 %v1364_v35, %s1005_s3  ;;  %v611_v49 = vpop.permute.xlu2 %610 }
 0x1c5   :  { %622 = vrot.lane.b32.xlu1 %v1320_v12, %s1006_s16  ;;  %v645_v21 = vpop.permute.xlu2 %644  ;;  %v92_v12 = vrot.slane %v91_v47, 4 }
 0x1c6   :  { %v649_v25 = vadd.f32 %v1367_v36, %v645_v21 }
 0x1c7   :  { %v93_v53 = vadd.f32 %v92_v12, %v91_v47 }
 0x1c9   :  { %v94_v24 = vrot.slane %v93_v53, 2 }
 0x1cb   :  { %v567_v27 = vpop.permute.xlu0 %566  ;;  %v95_v28 = vadd.f32 %v94_v24, %v93_v53 }
 0x1cc   :  { %v570_v11 = vadd.f32 %v567_v27, %v562_v44  ;;  %v582_v44 = vadd.f32 %v1315_v6, %v577_v39 }
 0x1cd   :  { %588 = vrot.lane.b32.xlu1 %v1370_v37, %s1005_s3  ;;  %v587_v35 = vpop.permute.xlu2 %586  ;;  %v96_v58 = vrot.slane %v95_v28, 1 }
 0x1ce   :  { %v1478_v0 = vadd.f32 %v570_v11, %v552_v4  ;;  %v590_v9 = vadd.f32 %v587_v35, %v582_v44 }
 0x1cf   :  { %v97_v50 = vadd.f32 %v96_v58, %v95_v28 }
 0x1d0   :  { %v592_v21 = vrot.slane %v590_v9, 7 }
 0x1d1   :  { %760 = vpush %v97_v50 }
 0x1d3   :  { %v579_v17 = vpop.permute.xlu0 %578 }
 0x1d4   :  { %v583_v47 = vadd.f32 %v1373_v40, %v579_v17 }
 0x1d5   :  { %568 = vrot.lane.b32.xlu1 %v1376_v41, %s1005_s3  ;;  %v655_v22 = vpop.permute.xlu2 %654 }
 0x1d6   :  { %v657_v51 = vadd.f32 %v655_v22, %v649_v25 }
 0x1d8   :  { %v659_v42 = vrot.slane %v657_v51, 7 }
 0x1db   :  { %v643_v2 = vpop.permute.xlu0 %642 }
 0x1dc   :  { %v648_v52 = vadd.f32 %v1323_v13, %v643_v2 }
 0x1dd   :  { %v635_v63 = vpop.permute.xlu2 %634 }
 0x1e3   :  { %v625_v20 = vpop.permute.xlu0 %624 }
 0x1e4   :  { %v629_v59 = vadd.f32 %v1379_v45, %v625_v20 }
 0x1e6   :  { %v637_v30 = vadd.f32 %v635_v63, %v629_v59 }
 0x1eb   :  { %v653_v8 = vpop.permute.xlu0 %652 }
 0x1ec   :  { %v656_v55 = vadd.f32 %v653_v8, %v648_v52 }
 0x1ee   :  { %v658_v37 = vrot.slane %v656_v55, 7 }
 0x1f0   :  { %v660_v7 = vsel %vm116_vm0, %v658_v37, %v659_v42  ;;  %v661_v41 = vsel %vm116_vm0, %v659_v42, %v658_v37 }
 0x1f3   :  { %v633_v33 = vpop.permute.xlu0 %632 }
 0x202   :  { %s761_s27 = spop %760 }
 0x203   :  { %v99_v55 = vstv %s761_s27 }
 0x20f   :  { %v666_v36 = vpop.xlane.xlu1 %665 }
 0x210   :  { %v667_v29 = vrot.slane %v666_v36, 4 }
 0x212   :  { %v668_v46 = vadd.f32 %v667_v29, %v666_v36 }
 0x214   :  { %v669_v13 = vrot.slane %v668_v46, 2 }
 0x216   :  { %v670_v57 = vadd.f32 %v669_v13, %v668_v46 }
 0x218   :  { %v671_v10 = vrot.slane %v670_v57, 1 }
 0x21a   :  { %v672_v16 = vadd.f32 %v671_v10, %v670_v57 }
 0x21c   :  { %762 = vpush %v672_v16 }
 0x227   :  { %v601_v56 = vpop.permute.xlu1 %600 }
 0x228   :  { %v606_v62 = vadd.f32 %v1326_v14, %v601_v56 }
 0x22a   :  { %v614_v19 = vadd.f32 %v611_v49, %v606_v62 }
 0x22c   :  { %v616_v32 = vrot.slane %v614_v19, 1 }
 0x22f   :  { %v613_v23 = vpop.permute.xlu1 %612 }
 0x230   :  { %v615_v38 = vadd.f32 %v613_v23, %v607_v54 }
 0x232   :  { %v617_v18 = vrot.slane %v615_v38, 1 }
 0x234   :  { %v619_v48 = vsel %vm181_vm1, %v617_v18, %v616_v32  ;;  %v618_v34 = vsel %vm181_vm1, %v616_v32, %v617_v18 }
 0x235   :  { %v639_v4 = vadd.f32 %v637_v30, %v619_v48 }
 0x237   :  { %v663_v61 = vadd.f32 %v660_v7, %v639_v4  ;;  %v623_v14 = vpop.permute.xlu1 %622 }
 0x238   :  { %v628_v31 = vadd.f32 %v1329_v15, %v623_v14 }
 0x239   :  { %698 = vst [vmem:[#allocation11 + $0x18] sm:$0xff] %v663_v61 }
 0x23a   :  { %v636_v45 = vadd.f32 %v633_v33, %v628_v31 }
 0x23c   :  { %v638_v26 = vadd.f32 %v636_v45, %v618_v34 }
 0x23e   :  { %v662_v49 = vadd.f32 %v661_v41, %v638_v26 }
 0x23f   :  { %v589_v27 = vpop.permute.xlu1 %588 }
 0x240   :  { %697 = vst [vmem:[#allocation11 + $0x10] sm:$0xff] %v662_v49  ;;  %v591_v11 = vadd.f32 %v589_v27, %v583_v47 }
 0x242   :  { %v593_v2 = vrot.slane %v591_v11, 7 }
 0x244   :  { %v595_v20 = vsel %vm116_vm0, %v593_v2, %v592_v21  ;;  %v594_v15 = vsel %vm116_vm0, %v592_v21, %v593_v2 }
 0x245   :  { %v596_v22 = vadd.f32 %v595_v20, %v1478_v0 }
 0x247   :  { %694 = vst [vmem:[#allocation11] sm:$0xff] %v596_v22  ;;  %v569_v6 = vpop.permute.xlu1 %568 }
 0x248   :  { %v571_v39 = vadd.f32 %v569_v6, %v1470_v60 }
 0x24a   :  { %v573_v40 = vadd.f32 %v571_v39, %v1464_v5 }
 0x24c   :  { %v597_v1 = vadd.f32 %v594_v15, %v573_v40 }
 0x24d   :  { %s763_s28 = spop %762 }
 0x24e   :  { %695 = vst [vmem:[#allocation11 + $0x8] sm:$0xff] %v597_v1  ;;  %v674_v60 = vstv %s763_s28 }
 0x24f   :  { %819 = vrcp.f32 %v674_v60  ;;  %729 = dma.vmem_to_hbm [thread:$0]  %s722_s18, 512, %s724_s21, [#allocation12], %s1000_s29, %s1000_s29, %s1001_s30   ;;  %v686_v35 = vand.u32 2147483648, %v674_v60  ;;  %v684_v12 = vand.u32 2147483647, %v674_v60  ;;  %vm680_vm1 = vweird.f32 %v674_v60 }
 0x250   :  { %742 = dma.vmem_to_hbm [thread:$0]  %s735_s23, 512, %s737_s26, [#allocation12], %s1000_s29, %s1000_s29, %s1001_s30  }
 0x251   :  { %v687_v52 = vor.u32 1.1754944e-38, %v686_v35  ;;  %vm685_vm9 = vcmp.eq.f32.partialorder %v684_v12, 8.507059e+37 }
 0x255   :  { %v820_v5 = vpop.eup %819 }
 0x256   :  { %v676_v0 = vmul.f32 %v820_v5, %v674_v60  ;;  %vm681_vm0 = vweird.f32 %v820_v5 }
 0x257   :  { %vm682_vm8 = vmor %vm680_vm1, %vm681_vm0 }
 0x258   :  { %v677_v17 = vsub.f32 1.0, %v676_v0 }
 0x25a   :  { %v678_v25 = vmul.f32 %v820_v5, %v677_v17 }
 0x25c   :  { %v679_v51 = vadd.f32 %v820_v5, %v678_v25 }
 0x25e   :  { %v683_v8 = vsel %vm682_vm8, %v820_v5, %v679_v51 }
 0x25f   :  { %v688_v53 = vsel %vm685_vm9, %v687_v52, %v683_v8 }
 0x260   :  { %v689_v42 = vmul.f32 %v688_v53, %v99_v55 }
 0x262   :  { %v690_v37 = vmul.f32 %v689_v42, %v1458_v43  ;;  %v691_v7 = vmul.f32 %v689_v42, %v1456_v3 }
 0x264   :  { %692 = vst [vmem:[#allocation10] sm:$0xff] %v690_v37 }
 0x265   :  { %693 = vst [vmem:[#allocation10 + $0x8] sm:$0xff] %v691_v7 }
 0x266   :  { %716 = dma.vmem_to_hbm [thread:$0]  %s709_s6, 256, %s711_s9, [#allocation4], %s1000_s29, %s1000_s29, %s1001_s30  }
 0x267   :  { %995 = dma.done.wait [#allocation4], 256  }
 0x268   :  { %996 = vsyncadd [#allocation4], 4294967040 }
 0x269   :  { %997 = dma.done.wait [#allocation12], 1024  }
 0x26a   :  { %998 = vsyncadd [#allocation12], 4294966272 }
 0x26b   :  { %755 = vsyncpa [#allocation3], 1 }
 0x26c   :  { %756 = vsyncpa [#allocation6], 1 }
 0x26d   :  { %757 = vsyncpa [#allocation9], 1 }
 0x26e   :  { %758 = vsyncpa [#allocation4], 1 }
 0x26f   :  { %759 = vsyncpa [#allocation12], 1 }

</bundles_post_ra>
